<compile_context>
chip_gen: v7x
topology: tpu7x:2x2x1
jax: 0.10.0
libtpu: 0.0.40
codegen_flags: <defaults>
</compile_context>

<pallas_src>
import functools

import jax
import jax.numpy as jnp
from jax import lax
from jax.experimental import pallas as pl
from jax.experimental.pallas import tpu as pltpu

_PAD = 8  # front/back sublane padding of the haloed scratch (keeps tap reads in-bounds)


def _sepconv_kernel(x_ref, top_ref, bot_ref, dw_ref, pw_ref, shift_ref,
                    out_ref, xin_ref, *, block_h, width, matmul_dtype):
    """One (batch, H-strip) tile per grid step.

    x_ref    : (block_h*W, C)   center strip (image rows flattened onto sublanes)
    top_ref  : (W, C)           image row just above the strip (clamped at border)
    bot_ref  : (W, C)           image row just below the strip (clamped at border)
    dw_ref   : (9, C)           depthwise 3x3 weights, row k -> (dy, dx) = divmod(k, 3)
    pw_ref   : (C, Co)          pointwise weights with BN scale folded in (matmul_dtype)
    shift_ref: (1, Co)          folded pw_bias*scale + beta - mean*scale
    out_ref  : (block_h*W, Co)
    xin_ref  : (2*_PAD + (block_h+2)*W, C) scratch holding image rows -1 .. block_h
    """
    TH, W = block_h, width
    TW = TH * W
    C = x_ref.shape[-1]
    s = pl.program_id(1)
    n_strips = pl.num_programs(1)
    f32 = jnp.float32
    xdt = xin_ref.dtype

    # ---- assemble the haloed strip (image rows -1 .. TH) in VMEM --------------
    # Halo rows that fall outside the image are zeroed (== conv zero padding in H).
    zeros_pad = jnp.zeros((_PAD, C), xdt)
    xin_ref[pl.ds(0, _PAD), :] = zeros_pad
    xin_ref[pl.ds(_PAD + (TH + 2) * W, _PAD), :] = zeros_pad
    valid_top = (s > 0).astype(xdt)
    valid_bot = (s < n_strips - 1).astype(xdt)
    xin_ref[pl.ds(_PAD, W), :] = top_ref[...] * valid_top
    xin_ref[pl.ds(_PAD + W, TW), :] = x_ref[...]
    xin_ref[pl.ds(_PAD + (TH + 1) * W, W), :] = bot_ref[...] * valid_bot

    # ---- (TW, 1) column masks for the dx = -1 / +1 taps (zero padding in W) ----
    col = lax.broadcasted_iota(jnp.int32, (TW, 1), 0) % W
    has_left = col > 0            # position has a valid left neighbour
    has_right = col < (W - 1)     # position has a valid right neighbour

    def tap(dy, dx):
        # input position (row + dy - 1, col + dx - 1) for every output position,
        # as an aligned-ish sublane-offset read of the haloed scratch.
        start = _PAD + dy * W + (dx - 1)
        return xin_ref[pl.ds(start, TW), :].astype(f32)

    def w(dy, dx):
        return dw_ref[pl.ds(dy * 3 + dx, 1), :].astype(f32)   # (1, C), sublane-bcast

    # ---- depthwise 3x3 (VPU multiply-adds), f32 accumulation -------------------
    acc_c = tap(0, 1) * w(0, 1) + tap(1, 1) * w(1, 1) + tap(2, 1) * w(2, 1)
    acc_l = tap(0, 0) * w(0, 0) + tap(1, 0) * w(1, 0) + tap(2, 0) * w(2, 0)
    acc_r = tap(0, 2) * w(0, 2) + tap(1, 2) * w(1, 2) + tap(2, 2) * w(2, 2)
    acc = acc_c + jnp.where(has_left, acc_l, 0.0) + jnp.where(has_right, acc_r, 0.0)

    # ---- pointwise 1x1 on the MXU (BN scale pre-folded into pw) ---------------
    y = jnp.dot(acc.astype(matmul_dtype), pw_ref[...],
                preferred_element_type=jnp.float32)            # (TW, Co)

    # ---- folded bias + BatchNorm(eval) shift, then Swish -----------------------
    y = y + shift_ref[...]
    y = y * jax.nn.sigmoid(y)
    out_ref[...] = y.astype(out_ref.dtype)


def _round_up(x, m):
    return ((x + m - 1) // m) * m


def _vmem_capacity_bytes():
    """Physical VMEM per TensorCore; conservative fallback when not queryable."""
    try:
        return int(pltpu.get_tpu_info().vmem_capacity_bytes)
    except Exception:
        return 64 * 2 ** 20          # v7x floor (v5e/v6e have 128 MiB)


def _vmem_bytes_estimate(block_h, width, c, co, x_bytes, mm_bytes, out_bytes):
    """Rough per-step VMEM footprint (bytes), lane-padded as Mosaic lays it out."""
    tw = block_h * width
    cl = _round_up(c, 128)
    col = _round_up(co, 128)
    tile_in = tw * cl * x_bytes
    halos = 2 * width * cl * x_bytes
    tile_out = tw * col * out_bytes
    weights = 16 * cl * 4 + cl * col * mm_bytes + 8 * col * 4
    scratch = (2 * _PAD + (block_h + 2) * width) * cl * x_bytes
    temps = 5 * tw * cl * 4 + 2 * tw * col * 4     # taps / accumulators / y
    return 2 * (tile_in + halos + tile_out + weights) + scratch + temps


def _choose_block_h(H, width, c, co, x_bytes, mm_bytes, out_bytes,
                    budget_bytes, max_h):
    """Largest divisor of H (<= max_h) whose working set fits the VMEM budget."""
    best = 1
    for d in range(1, max(max_h, 1) + 1):
        if H % d == 0 and _vmem_bytes_estimate(
                d, width, c, co, x_bytes, mm_bytes, out_bytes) <= budget_bytes:
            best = d
    return best


@functools.partial(jax.jit, static_argnames=("block_h", "matmul_dtype"))
def separable_conv2d(x_nchw, dw_weight, pw_weight, pw_bias,
                     bn_gamma, bn_beta, bn_mean, bn_var, eps=1e-3,
                     block_h=None, matmul_dtype=jnp.bfloat16):
    """Forward pass of SeparableConv2d (norm='bn' eval mode, activation='swish').

    x_nchw   : (N, C, H, W)   PyTorch-layout input
    dw_weight: (C, 1, 3, 3)   depthwise conv weight (groups=C, no bias)
    pw_weight: (Co, C, 1, 1)  pointwise conv weight
    pw_bias  : (Co,)
    bn_*     : (Co,)          BatchNorm2d affine params / running stats
    returns  : (N, Co, H, W)
    """
    N, C, H, W = x_nchw.shape
    Co = pw_weight.shape[0]
    if W % 8 != 0:
        raise NotImplementedError("W must be a multiple of 8")

    x_bytes = jnp.dtype(x_nchw.dtype).itemsize
    mm_bytes = jnp.dtype(matmul_dtype).itemsize
    out_bytes = x_bytes

    cap = _vmem_capacity_bytes()
    # Keep the per-step working set well under physical VMEM (double buffers +
    # Mosaic internal scratch must also fit): ~30% of capacity, capped at 48 MiB.
    budget = min(max(int(cap * 0.3), 8 * 2 ** 20), 48 * 2 ** 20)

    if block_h is None:
        # At batch 1 keep >= 2 grid steps so both v7x TensorCores get work.
        max_h = H // 2 if (N == 1 and H > 1) else H
        block_h = _choose_block_h(H, W, C, Co, x_bytes, mm_bytes, out_bytes,
                                  budget, max_h)
    if H % block_h != 0:
        raise ValueError("block_h must divide H")
    n_strips = H // block_h
    TW = block_h * W

    # NCHW -> NHWC (interface requirement only) -> flatten spatial.  Channels are
    # NOT padded in HBM: full-dim channel blocks are exempt from the 128-lane rule.
    x = jnp.transpose(x_nchw, (0, 2, 3, 1)).reshape(N, H * W, C)

    dw = jnp.transpose(dw_weight[:, 0, :, :], (1, 2, 0))        # (3,3,C)
    dw = dw.reshape(9, C).astype(jnp.float32)                   # row k = dy*3+dx
    pw = jnp.transpose(pw_weight[:, :, 0, 0], (1, 0)).astype(jnp.float32)   # (C,Co)

    # fold pointwise bias + eval-mode BN into the pw weights (scale) and a shift,
    # all in f32 before any cast to the matmul dtype.
    scale = (bn_gamma / jnp.sqrt(bn_var + eps)).astype(jnp.float32)          # (Co,)
    shift = (pw_bias * scale + bn_beta - bn_mean * scale).astype(jnp.float32)
    pw_scaled = (pw * scale[None, :]).astype(matmul_dtype)                   # (C,Co)
    shift = shift.reshape(1, Co)

    est = _vmem_bytes_estimate(block_h, W, C, Co, x_bytes, mm_bytes, out_bytes)
    vmem_limit = int(min(max(2 * est, 16 * 2 ** 20),
                         max(24 * 2 ** 20, int(cap * 0.45))))

    kernel = functools.partial(_sepconv_kernel, block_h=block_h, width=W,
                               matmul_dtype=matmul_dtype)

    out = pl.pallas_call(
        kernel,
        out_shape=jax.ShapeDtypeStruct((N, H * W, Co), x_nchw.dtype),
        grid_spec=pltpu.PrefetchScalarGridSpec(
            num_scalar_prefetch=0,
            grid=(N, n_strips),
            in_specs=[
                # center strip: block_h image rows, flattened to (block_h*W, C)
                pl.BlockSpec((pl.Squeezed(), TW, C), lambda n, s: (n, s, 0)),
                # 1-row halo above / below (clamped at the border; zeroed in-kernel)
                pl.BlockSpec((pl.Squeezed(), W, C),
                             lambda n, s: (n, jnp.maximum(s * block_h - 1, 0), 0)),
                pl.BlockSpec((pl.Squeezed(), W, C),
                             lambda n, s: (n, jnp.minimum((s + 1) * block_h, H - 1), 0)),
                # grid-invariant operands (constant index maps -> fetched once)
                pl.BlockSpec((9, C), lambda n, s: (0, 0)),
                pl.BlockSpec((C, Co), lambda n, s: (0, 0)),
                pl.BlockSpec((1, Co), lambda n, s: (0, 0)),
            ],
            out_specs=pl.BlockSpec((pl.Squeezed(), TW, Co), lambda n, s: (n, s, 0)),
            scratch_shapes=[
                pltpu.VMEM((2 * _PAD + (block_h + 2) * W, C), x.dtype)],
        ),
        compiler_params=pltpu.CompilerParams(
            dimension_semantics=("parallel", "parallel"),
            vmem_limit_bytes=vmem_limit),
    )(x, x, x, dw, pw_scaled, shift)

    # (N, H*W, Co) -> (N, H, W, Co) -> NCHW (PyTorch interface only).
    out = out.reshape(N, H, W, Co)
    return jnp.transpose(out, (0, 3, 1, 2))


def _reference(x_nchw, dw_weight, pw_weight, pw_bias,
               bn_gamma, bn_beta, bn_mean, bn_var, eps=1e-3):
    """Pure-JAX reference (lax convs) for correctness checking."""
    x = x_nchw.astype(jnp.float32)
    C = x.shape[1]
    y = lax.conv_general_dilated(
        x, dw_weight.astype(jnp.float32),
        window_strides=(1, 1), padding=((1, 1), (1, 1)),
        dimension_numbers=("NCHW", "OIHW", "NCHW"),
        feature_group_count=C)
    y = lax.conv_general_dilated(
        y, pw_weight.astype(jnp.float32),
        window_strides=(1, 1), padding="VALID",
        dimension_numbers=("NCHW", "OIHW", "NCHW"))
    y = y + pw_bias[None, :, None, None]
    y = (y - bn_mean[None, :, None, None]) / jnp.sqrt(bn_var[None, :, None, None] + eps)
    y = y * bn_gamma[None, :, None, None] + bn_beta[None, :, None, None]
    return y * jax.nn.sigmoid(y)


if __name__ == "__main__":
    key = jax.random.PRNGKey(0)
    N, C, H, W = 2, 4, 16, 16
    Co = C  # out_channels defaults to in_channels

    k = jax.random.split(key, 8)
    x = jax.random.normal(k[0], (N, C, H, W), jnp.float32)
    dw_weight = jax.random.normal(k[1], (C, 1, 3, 3), jnp.float32) * 0.2
    pw_weight = jax.random.normal(k[2], (Co, C, 1, 1), jnp.float32) * 0.2
    pw_bias = jax.random.normal(k[3], (Co,), jnp.float32) * 0.1
    bn_gamma = 1.0 + 0.1 * jax.random.normal(k[4], (Co,), jnp.float32)
    bn_beta = 0.1 * jax.random.normal(k[5], (Co,), jnp.float32)
    bn_mean = 0.05 * jax.random.normal(k[6], (Co,), jnp.float32)
    bn_var = 1.0 + 0.1 * jax.nn.softplus(jax.random.normal(k[7], (Co,), jnp.float32))

    ref = _reference(x, dw_weight, pw_weight, pw_bias,
                     bn_gamma, bn_beta, bn_mean, bn_var)

    # f32 matmul path at several strip sizes (exercises the single-strip and
    # multi-strip/halo paths), the default bf16 matmul path, and the auto block_h.
    configs = (
        (None, jnp.bfloat16, 2.5e-2),   # auto block_h, default bf16 MXU path
        (16, jnp.float32, 5e-3),
        (8, jnp.float32, 5e-3),
        (4, jnp.float32, 5e-3),
        (8, jnp.bfloat16, 2.5e-2),
    )
    for block_h, mm_dtype, tol in configs:
        out = separable_conv2d(x, dw_weight, pw_weight, pw_bias,
                               bn_gamma, bn_beta, bn_mean, bn_var,
                               block_h=block_h, matmul_dtype=mm_dtype)
        out = jax.block_until_ready(out)
        assert out.shape == (N, Co, H, W)
        assert jnp.allclose(out, ref, atol=tol, rtol=tol), (
            f"mismatch vs reference (block_h={block_h}, matmul_dtype={mm_dtype})")

    print("KERNEL_OK")
</pallas_src>

<mosaic_0001>
module attributes {stable_mosaic.version = 11 : i64} {
  func.func @_sepconv_kernel(%arg0: i32, %arg1: i32, %arg2: memref<1x256x4xf32, #tpu.memory_space<vmem>>, %arg3: memref<1x16x4xf32, #tpu.memory_space<vmem>>, %arg4: memref<1x16x4xf32, #tpu.memory_space<vmem>>, %arg5: memref<9x4xf32, #tpu.memory_space<vmem>>, %arg6: memref<4x4xbf16, #tpu.memory_space<vmem>>, %arg7: memref<1x4xf32, #tpu.memory_space<vmem>>, %arg8: memref<1x256x4xf32, #tpu.memory_space<vmem>>, %arg9: memref<304x4xf32, #tpu.memory_space<vmem>>) attributes {dimension_semantics = [#tpu.dimension_semantics<parallel>, #tpu.dimension_semantics<parallel>], iteration_bounds = array<i64: 2, 1>, scalar_prefetch = 0 : i64, scratch_operands = 1 : i64, tpu.core_type = #tpu.core_type<tc>, window_params = [{transform_indices = @transform_0, window_bounds = array<i64: 1, 256, 4>}, {transform_indices = @transform_1, window_bounds = array<i64: 1, 16, 4>}, {transform_indices = @transform_2, window_bounds = array<i64: 1, 16, 4>}, {pipeline_mode = #tpu.pipeline_mode<synchronous>, transform_indices = @transform_3, window_bounds = array<i64: 9, 4>}, {pipeline_mode = #tpu.pipeline_mode<synchronous>, transform_indices = @transform_4, window_bounds = array<i64: 4, 4>}, {pipeline_mode = #tpu.pipeline_mode<synchronous>, transform_indices = @transform_5, window_bounds = array<i64: 1, 4>}, {transform_indices = @transform_6, window_bounds = array<i64: 1, 256, 4>}]} {
    %cst = arith.constant 0.000000e+00 : f32
    %0 = vector.broadcast %cst : f32 to vector<8x4xf32>
    %c0 = arith.constant 0 : index
    %c0_0 = arith.constant 0 : index
    %1 = vector.load %arg9[%c0, %c0_0] : memref<304x4xf32, #tpu.memory_space<vmem>>, vector<8x4xf32>
    tpu.vector_store %arg9[%c0, %c0_0], %0 {strides = array<i32>} : memref<304x4xf32, #tpu.memory_space<vmem>>, vector<8x4xf32>,
    %c296 = arith.constant 296 : index
    %c0_1 = arith.constant 0 : index
    %2 = vector.load %arg9[%c296, %c0_1] : memref<304x4xf32, #tpu.memory_space<vmem>>, vector<8x4xf32>
    tpu.vector_store %arg9[%c296, %c0_1], %0 {strides = array<i32>} : memref<304x4xf32, #tpu.memory_space<vmem>>, vector<8x4xf32>,
    %c0_i32 = arith.constant 0 : i32
    %3 = arith.cmpi sgt, %arg1, %c0_i32 : i32
    %4 = arith.extui %3 : i1 to i32
    %5 = arith.sitofp %4 : i32 to f32
    %c0_i32_2 = arith.constant 0 : i32
    %6 = arith.cmpi slt, %arg1, %c0_i32_2 : i32
    %7 = arith.extui %6 : i1 to i32
    %8 = arith.sitofp %7 : i32 to f32
    %c0_3 = arith.constant 0 : index
    %c0_4 = arith.constant 0 : index
    %c0_5 = arith.constant 0 : index
    %9 = vector.load %arg3[%c0_3, %c0_4, %c0_5] : memref<1x16x4xf32, #tpu.memory_space<vmem>>, vector<1x16x4xf32>
    %10 = vector.shape_cast %9 : vector<1x16x4xf32> to vector<16x4xf32>
    %11 = vector.broadcast %5 : f32 to vector<16x4xf32>
    %12 = arith.mulf %10, %11 : vector<16x4xf32>
    %c8 = arith.constant 8 : index
    %c0_6 = arith.constant 0 : index
    %13 = vector.load %arg9[%c8, %c0_6] : memref<304x4xf32, #tpu.memory_space<vmem>>, vector<16x4xf32>
    tpu.vector_store %arg9[%c8, %c0_6], %12 {strides = array<i32>} : memref<304x4xf32, #tpu.memory_space<vmem>>, vector<16x4xf32>,
    %c0_7 = arith.constant 0 : index
    %c0_8 = arith.constant 0 : index
    %c0_9 = arith.constant 0 : index
    %14 = vector.load %arg2[%c0_7, %c0_8, %c0_9] : memref<1x256x4xf32, #tpu.memory_space<vmem>>, vector<1x256x4xf32>
    %15 = vector.shape_cast %14 : vector<1x256x4xf32> to vector<256x4xf32>
    %c24 = arith.constant 24 : index
    %c0_10 = arith.constant 0 : index
    %16 = vector.load %arg9[%c24, %c0_10] : memref<304x4xf32, #tpu.memory_space<vmem>>, vector<256x4xf32>
    tpu.vector_store %arg9[%c24, %c0_10], %15 {strides = array<i32>} : memref<304x4xf32, #tpu.memory_space<vmem>>, vector<256x4xf32>,
    %c0_11 = arith.constant 0 : index
    %c0_12 = arith.constant 0 : index
    %c0_13 = arith.constant 0 : index
    %17 = vector.load %arg4[%c0_11, %c0_12, %c0_13] : memref<1x16x4xf32, #tpu.memory_space<vmem>>, vector<1x16x4xf32>
    %18 = vector.shape_cast %17 : vector<1x16x4xf32> to vector<16x4xf32>
    %19 = vector.broadcast %8 : f32 to vector<16x4xf32>
    %20 = arith.mulf %18, %19 : vector<16x4xf32>
    %c280 = arith.constant 280 : index
    %c0_14 = arith.constant 0 : index
    %21 = vector.load %arg9[%c280, %c0_14] : memref<304x4xf32, #tpu.memory_space<vmem>>, vector<16x4xf32>
    tpu.vector_store %arg9[%c280, %c0_14], %20 {strides = array<i32>} : memref<304x4xf32, #tpu.memory_space<vmem>>, vector<16x4xf32>,
    %22 = tpu.iota {dimensions = array<i32: 0>} : vector<256x1xi32>
    %c16_i32 = arith.constant 16 : i32
    %c0_i32_15 = arith.constant 0 : i32
    %23 = arith.cmpi eq, %c16_i32, %c0_i32_15 : i32
    %c1_i32 = arith.constant 1 : i32
    %24 = arith.select %23, %c1_i32, %c16_i32 : i32
    %25 = vector.broadcast %24 : i32 to vector<256x1xi32>
    %26 = arith.remsi %22, %25 : vector<256x1xi32>
    %c0_i32_16 = arith.constant 0 : i32
    %27 = vector.broadcast %c0_i32_16 : i32 to vector<256x1xi32>
    %28 = arith.cmpi ne, %26, %27 : vector<256x1xi32>
    %c0_i32_17 = arith.constant 0 : i32
    %29 = vector.broadcast %c0_i32_17 : i32 to vector<256x1xi32>
    %30 = arith.cmpi slt, %26, %29 : vector<256x1xi32>
    %c0_i32_18 = arith.constant 0 : i32
    %31 = arith.cmpi slt, %24, %c0_i32_18 : i32
    %32 = vector.broadcast %31 : i1 to vector<256x1xi1>
    %33 = vector.broadcast %32 : vector<256x1xi1> to vector<256x1xi1>
    %34 = arith.xori %30, %33 : vector<256x1xi1>
    %35 = arith.andi %34, %28 : vector<256x1xi1>
    %36 = vector.broadcast %24 : i32 to vector<256x1xi32>
    %37 = arith.addi %26, %36 : vector<256x1xi32>
    %38 = arith.select %35, %37, %26 : vector<256x1xi1>, vector<256x1xi32>
    %c0_i32_19 = arith.constant 0 : i32
    %39 = vector.broadcast %c0_i32_19 : i32 to vector<256x1xi32>
    %40 = arith.cmpi sgt, %38, %39 : vector<256x1xi32>
    %c15_i32 = arith.constant 15 : i32
    %41 = vector.broadcast %c15_i32 : i32 to vector<256x1xi32>
    %42 = arith.cmpi slt, %38, %41 : vector<256x1xi32>
    %c8_20 = arith.constant 8 : index
    %c0_21 = arith.constant 0 : index
    %43 = vector.load %arg9[%c8_20, %c0_21] : memref<304x4xf32, #tpu.memory_space<vmem>>, vector<256x4xf32>
    %c1 = arith.constant 1 : index
    %c0_22 = arith.constant 0 : index
    %44 = vector.load %arg5[%c1, %c0_22] : memref<9x4xf32, #tpu.memory_space<vmem>>, vector<1x4xf32>
    %45 = vector.broadcast %44 : vector<1x4xf32> to vector<256x4xf32>
    %46 = arith.mulf %43, %45 : vector<256x4xf32>
    %c24_23 = arith.constant 24 : index
    %c0_24 = arith.constant 0 : index
    %47 = vector.load %arg9[%c24_23, %c0_24] : memref<304x4xf32, #tpu.memory_space<vmem>>, vector<256x4xf32>
    %c4 = arith.constant 4 : index
    %c0_25 = arith.constant 0 : index
    %48 = vector.load %arg5[%c4, %c0_25] : memref<9x4xf32, #tpu.memory_space<vmem>>, vector<1x4xf32>
    %49 = vector.broadcast %48 : vector<1x4xf32> to vector<256x4xf32>
    %50 = arith.mulf %47, %49 : vector<256x4xf32>
    %51 = arith.addf %46, %50 : vector<256x4xf32>
    %c40 = arith.constant 40 : index
    %c0_26 = arith.constant 0 : index
    %52 = vector.load %arg9[%c40, %c0_26] : memref<304x4xf32, #tpu.memory_space<vmem>>, vector<256x4xf32>
    %c7 = arith.constant 7 : index
    %c0_27 = arith.constant 0 : index
    %53 = vector.load %arg5[%c7, %c0_27] : memref<9x4xf32, #tpu.memory_space<vmem>>, vector<1x4xf32>
    %54 = vector.broadcast %53 : vector<1x4xf32> to vector<256x4xf32>
    %55 = arith.mulf %52, %54 : vector<256x4xf32>
    %56 = arith.addf %51, %55 : vector<256x4xf32>
    %c7_28 = arith.constant 7 : index
    %c0_29 = arith.constant 0 : index
    %57 = vector.load %arg9[%c7_28, %c0_29] : memref<304x4xf32, #tpu.memory_space<vmem>>, vector<256x4xf32>
    %c0_30 = arith.constant 0 : index
    %c0_31 = arith.constant 0 : index
    %58 = vector.load %arg5[%c0_30, %c0_31] : memref<9x4xf32, #tpu.memory_space<vmem>>, vector<1x4xf32>
    %59 = vector.broadcast %58 : vector<1x4xf32> to vector<256x4xf32>
    %60 = arith.mulf %57, %59 : vector<256x4xf32>
    %c23 = arith.constant 23 : index
    %c0_32 = arith.constant 0 : index
    %61 = vector.load %arg9[%c23, %c0_32] : memref<304x4xf32, #tpu.memory_space<vmem>>, vector<256x4xf32>
    %c3 = arith.constant 3 : index
    %c0_33 = arith.constant 0 : index
    %62 = vector.load %arg5[%c3, %c0_33] : memref<9x4xf32, #tpu.memory_space<vmem>>, vector<1x4xf32>
    %63 = vector.broadcast %62 : vector<1x4xf32> to vector<256x4xf32>
    %64 = arith.mulf %61, %63 : vector<256x4xf32>
    %65 = arith.addf %60, %64 : vector<256x4xf32>
    %c39 = arith.constant 39 : index
    %c0_34 = arith.constant 0 : index
    %66 = vector.load %arg9[%c39, %c0_34] : memref<304x4xf32, #tpu.memory_space<vmem>>, vector<256x4xf32>
    %c6 = arith.constant 6 : index
    %c0_35 = arith.constant 0 : index
    %67 = vector.load %arg5[%c6, %c0_35] : memref<9x4xf32, #tpu.memory_space<vmem>>, vector<1x4xf32>
    %68 = vector.broadcast %67 : vector<1x4xf32> to vector<256x4xf32>
    %69 = arith.mulf %66, %68 : vector<256x4xf32>
    %70 = arith.addf %65, %69 : vector<256x4xf32>
    %c9 = arith.constant 9 : index
    %c0_36 = arith.constant 0 : index
    %71 = vector.load %arg9[%c9, %c0_36] : memref<304x4xf32, #tpu.memory_space<vmem>>, vector<256x4xf32>
    %c2 = arith.constant 2 : index
    %c0_37 = arith.constant 0 : index
    %72 = vector.load %arg5[%c2, %c0_37] : memref<9x4xf32, #tpu.memory_space<vmem>>, vector<1x4xf32>
    %73 = vector.broadcast %72 : vector<1x4xf32> to vector<256x4xf32>
    %74 = arith.mulf %71, %73 : vector<256x4xf32>
    %c25 = arith.constant 25 : index
    %c0_38 = arith.constant 0 : index
    %75 = vector.load %arg9[%c25, %c0_38] : memref<304x4xf32, #tpu.memory_space<vmem>>, vector<256x4xf32>
    %c5 = arith.constant 5 : index
    %c0_39 = arith.constant 0 : index
    %76 = vector.load %arg5[%c5, %c0_39] : memref<9x4xf32, #tpu.memory_space<vmem>>, vector<1x4xf32>
    %77 = vector.broadcast %76 : vector<1x4xf32> to vector<256x4xf32>
    %78 = arith.mulf %75, %77 : vector<256x4xf32>
    %79 = arith.addf %74, %78 : vector<256x4xf32>
    %c41 = arith.constant 41 : index
    %c0_40 = arith.constant 0 : index
    %80 = vector.load %arg9[%c41, %c0_40] : memref<304x4xf32, #tpu.memory_space<vmem>>, vector<256x4xf32>
    %c8_41 = arith.constant 8 : index
    %c0_42 = arith.constant 0 : index
    %81 = vector.load %arg5[%c8_41, %c0_42] : memref<9x4xf32, #tpu.memory_space<vmem>>, vector<1x4xf32>
    %82 = vector.broadcast %81 : vector<1x4xf32> to vector<256x4xf32>
    %83 = arith.mulf %80, %82 : vector<256x4xf32>
    %84 = arith.addf %79, %83 : vector<256x4xf32>
    %cst_43 = arith.constant 0.000000e+00 : f32
    %85 = vector.shape_cast %40 : vector<256x1xi1> to vector<256x1xi1>
    %86 = vector.broadcast %85 : vector<256x1xi1> to vector<256x4xi1>
    %87 = vector.broadcast %cst_43 : f32 to vector<256x4xf32>
    %88 = arith.select %86, %70, %87 : vector<256x4xi1>, vector<256x4xf32>
    %89 = arith.addf %56, %88 : vector<256x4xf32>
    %cst_44 = arith.constant 0.000000e+00 : f32
    %90 = vector.shape_cast %42 : vector<256x1xi1> to vector<256x1xi1>
    %91 = vector.broadcast %90 : vector<256x1xi1> to vector<256x4xi1>
    %92 = vector.broadcast %cst_44 : f32 to vector<256x4xf32>
    %93 = arith.select %91, %84, %92 : vector<256x4xi1>, vector<256x4xf32>
    %94 = arith.addf %89, %93 : vector<256x4xf32>
    %95 = arith.truncf %94 : vector<256x4xf32> to vector<256x4xbf16>
    %c0_45 = arith.constant 0 : index
    %c0_46 = arith.constant 0 : index
    %96 = vector.load %arg6[%c0_45, %c0_46] : memref<4x4xbf16, #tpu.memory_space<vmem>>, vector<4x4xbf16>
    %cst_47 = arith.constant dense<0.000000e+00> : vector<256x4xf32>
    %97 = tpu.matmul %95, %96, %cst_47 {dimension_numbers = #tpu.dot_dimension_numbers<[1], [0], [0], [1], [0, 0, 1, 1], [], []>} : vector<256x4xbf16>, vector<4x4xbf16>, vector<256x4xf32> -> vector<256x4xf32>
    %c0_48 = arith.constant 0 : index
    %c0_49 = arith.constant 0 : index
    %98 = vector.load %arg7[%c0_48, %c0_49] : memref<1x4xf32, #tpu.memory_space<vmem>>, vector<1x4xf32>
    %99 = vector.broadcast %98 : vector<1x4xf32> to vector<256x4xf32>
    %100 = arith.addf %97, %99 : vector<256x4xf32>
    %101 = arith.negf %100 : vector<256x4xf32>
    %102 = math.exp %101 : vector<256x4xf32>
    %cst_50 = arith.constant 1.000000e+00 : f32
    %103 = vector.broadcast %cst_50 : f32 to vector<256x4xf32>
    %104 = arith.addf %103, %102 : vector<256x4xf32>
    %105 = arith.divf %103, %104 : vector<256x4xf32>
    %106 = arith.mulf %100, %105 : vector<256x4xf32>
    %c0_51 = arith.constant 0 : index
    %c0_52 = arith.constant 0 : index
    %c0_53 = arith.constant 0 : index
    %107 = vector.load %arg8[%c0_51, %c0_52, %c0_53] : memref<1x256x4xf32, #tpu.memory_space<vmem>>, vector<1x256x4xf32>
    %108 = vector.shape_cast %107 : vector<1x256x4xf32> to vector<256x4xf32>
    %109 = vector.shape_cast %106 : vector<256x4xf32> to vector<1x256x4xf32>
    tpu.vector_store %arg8[%c0_51, %c0_52, %c0_53], %109 {strides = array<i32>} : memref<1x256x4xf32, #tpu.memory_space<vmem>>, vector<1x256x4xf32>,
    return
  }
  func.func @transform_0(%arg0: i32, %arg1: i32) -> (i32, i32, i32) {
    %c0_i32 = arith.constant 0 : i32
    %c0_i32_0 = arith.constant 0 : i32
    return %arg0, %arg1, %c0_i32 : i32, i32, i32
  }
  func.func @transform_1(%arg0: i32, %arg1: i32) -> (i32, i32, i32) {
    %c16_i32 = arith.constant 16 : i32
    %0 = arith.muli %arg1, %c16_i32 : i32
    %c1_i32 = arith.constant 1 : i32
    %1 = arith.subi %0, %c1_i32 : i32
    %c0_i32 = arith.constant 0 : i32
    %2 = arith.maxsi %1, %c0_i32 : i32
    %c0_i32_0 = arith.constant 0 : i32
    %c0_i32_1 = arith.constant 0 : i32
    return %arg0, %2, %c0_i32_0 : i32, i32, i32
  }
  func.func @transform_2(%arg0: i32, %arg1: i32) -> (i32, i32, i32) {
    %c1_i32 = arith.constant 1 : i32
    %0 = arith.addi %arg1, %c1_i32 : i32
    %c16_i32 = arith.constant 16 : i32
    %1 = arith.muli %0, %c16_i32 : i32
    %c15_i32 = arith.constant 15 : i32
    %2 = arith.minsi %1, %c15_i32 : i32
    %c0_i32 = arith.constant 0 : i32
    %c0_i32_0 = arith.constant 0 : i32
    return %arg0, %2, %c0_i32 : i32, i32, i32
  }
  func.func @transform_3(%arg0: i32, %arg1: i32) -> (i32, i32) {
    %c0_i32 = arith.constant 0 : i32
    %c0_i32_0 = arith.constant 0 : i32
    %c0_i32_1 = arith.constant 0 : i32
    return %c0_i32, %c0_i32_0 : i32, i32
  }
  func.func @transform_4(%arg0: i32, %arg1: i32) -> (i32, i32) {
    %c0_i32 = arith.constant 0 : i32
    %c0_i32_0 = arith.constant 0 : i32
    %c0_i32_1 = arith.constant 0 : i32
    return %c0_i32, %c0_i32_0 : i32, i32
  }
  func.func @transform_5(%arg0: i32, %arg1: i32) -> (i32, i32) {
    %c0_i32 = arith.constant 0 : i32
    %c0_i32_0 = arith.constant 0 : i32
    %c0_i32_1 = arith.constant 0 : i32
    return %c0_i32, %c0_i32_0 : i32, i32
  }
  func.func @transform_6(%arg0: i32, %arg1: i32) -> (i32, i32, i32) {
    %c0_i32 = arith.constant 0 : i32
    %c0_i32_0 = arith.constant 0 : i32
    return %arg0, %arg1, %c0_i32 : i32, i32, i32
  }
}

</mosaic_0001>

<bundles_post_ra>
// kernel: separable_conv2d.1
= control target key start
LH: loop header
LB: loop body
LE: loop exit
PB: predicated region body
PF: predicated region fallthrough
CT: control target
= control target key end

     0   :  { %s2861_s21 = smov 0   ;;  %s2863_s22 = smov 0   ;;  %s4137_s0 = inlined_call_operand.vmem [shape: f32[2,256,4], index: 0, kind: input, shape index: {}, may-alias: {0,1,2}]   ;;  %s4138_s1 = inlined_call_operand.vmem [shape: f32[2,256,4], index: 1, kind: input, shape index: {}, may-alias: {0,1,2}]   ;;  %s4139_s2 = inlined_call_operand.vmem [shape: f32[2,256,4], index: 2, kind: input, shape index: {}, may-alias: {0,1,2}]   ;;  %s4140_s3 = inlined_call_operand.vmem [shape: f32[9,4], index: 3, kind: input, shape index: {}]   ;;  %s4141_s4 = inlined_call_operand.vmem [shape: bf16[4,4], index: 4, kind: input, shape index: {}]   ;;  %s4142_s5 = inlined_call_operand.vmem [shape: f32[1,4], index: 5, kind: input, shape index: {}]   ;;  %s4143_s6 = inlined_call_operand.vmem [shape: f32[2,256,4], index: 6, kind: output, shape index: {}]  }
   0x1   :  { %s2865_s23 = smov 0  }
   0x2 LB: > { %s28_s24 = sadd.s32 1, %s2819_s22  ;;  %p2497_p0 = scmp.ge.s32.totalorder %s2823_s23, 1  ;;  %s2823_s23 = sphi %s2865_s23, %s16_s23   ;;  %s2819_s22 = sphi %s2863_s22, %s4242_s22   ;;  %s2815_s21 = sphi %s2861_s21, %s4241_s21  }
   0x3   : > { %p30_p1 = scmp.ge.s32.totalorder %s28_s24, 2  ;;  %p299_p2 = scmp.lt.s32.totalorder %s2823_s23, 3 }
   0x5   : > { %s4244_s24 = smov (%p30_p1, %s28_s24), 0  ;;  %p300_p3 = pnand %p2497_p0, %p299_p2 }
   0x7   : > { %303 = sbr.rel (%p300_p3) target bundleno = 451 (0x1c3), region = 44 }
   0xe   : > { %v1893_v0 = vld [vmem:[%s4141_s4] sm:$0x3]  ;;  %vm1949_vm0 = vcmask 1041408   ;;  %p364_p4 = scmp.lt.s32.totalorder %s2815_s21, 1  ;;  %vm420_vm1 = vcmask 31744   ;;  %v507_v1 = vlaneseq  ;;  %v2825_v3 = vmov 0.0  }
   0xf   : > { %2626 = vmatprep.subr.msk.bf16.mxu1 %vm1949_vm0, %v1893_v0  ;;  %v1951_v2 = vsel %vm1949_vm0, %v1893_v0, 0  ;;  %2625 = vmatprep.subr.msk.bf16.mxu0 %vm1949_vm0, %v1893_v0  ;;  %421 = vst.msk [vmem:[#allocation2] sm:$0xff] %vm420_vm1, %v2825_v3  ;;  %422 = vst.msk [vmem:[#allocation2 + $0x128] sm:$0xff] %vm420_vm1, %v2825_v3  ;;  %v2939_v24 = vld [vmem:[%s4140_s3 + $0x1] ss:$0 sm:$0xff] }
  0x10   : > { %2624 = vmatpush3.bf16.msra.mxu1 %v1951_v2  ;;  %2590 = vmatpush3.bf16.msra.mxu0 %v1951_v2  ;;  %s4246_s21 = smov (!%p364_p4, %s2815_s21), 1  ;;  %v2884_v4 = vshrl.u32 %v507_v1, 7  ;;  %v2952_v32 = vld [vmem:[%s4140_s3 + $0x4] ss:$0 sm:$0xff]  ;;  %v2984_v44 = vld [vmem:[%s4140_s3 + $0x7] ss:$0 sm:$0xff] }
  0x11   : > { %s2886_s27 = sshll.u32 %s4246_s21, 8  ;;  %v2998_v53 = vld [vmem:[%s4140_s3] ss:$0 sm:$0xff] }
  0x12   : > { %4147 = vst [vmem:[#allocation3_spill] sm:$0xff] %v2884_v4  ;;  %s2892_s30 = scalar_lea.vmem %s4137_s0, %s2886_s27  ;;  %s385_s9 = scalar_lea.vmem %s4138_s1, %s2886_s27  ;;  %v2908_v11 = vadd.s32 128, %v2884_v4  ;;  %v2916_v14 = vadd.s32 136, %v2884_v4  ;;  %v2920_v16 = vadd.s32 144, %v2884_v4  ;;  %v2923_v17 = vadd.s32 152, %v2884_v4 }
  0x13   : > { %v449_v5 = vld [vmem:[%s2892_s30 + $0x68] sm:$0xff]  ;;  %v450_v6 = vld [vmem:[%s2892_s30 + $0x70] sm:$0xff]  ;;  %v451_v7 = vld [vmem:[%s2892_s30 + $0x78] sm:$0xff]  ;;  %v2930_v21 = vadd.s32 8, %v2884_v4  ;;  %v2934_v23 = vadd.s32 16, %v2884_v4  ;;  %v2946_v30 = vadd.s32 24, %v2884_v4  ;;  %s4038_s14 = scalar_lea.vmem %s4143_s6, %s2886_s27 }
  0x14   : > { %v452_v8 = vld [vmem:[%s2892_s30 + $0x80] sm:$0xff]  ;;  %v453_v9 = vld [vmem:[%s2892_s30 + $0x88] sm:$0xff]  ;;  %v454_v10 = vld [vmem:[%s2892_s30 + $0x90] sm:$0xff]  ;;  %481 = vst.msk [vmem:[#allocation2 + $0x80] sm:$0xff] %vm420_vm1, %v449_v5  ;;  %v656_v31 = vand.u32 15, %v2908_v11  ;;  %v2961_v36 = vadd.s32 160, %v2884_v4 }
  0x15   : > { %482 = vst.msk [vmem:[#allocation2 + $0x88] sm:$0xff] %vm420_vm1, %v450_v6  ;;  %483 = vst.msk [vmem:[#allocation2 + $0x90] sm:$0xff] %vm420_vm1, %v451_v7  ;;  %v455_v12 = vld [vmem:[%s2892_s30 + $0x98] sm:$0xff]  ;;  %v456_v13 = vld [vmem:[%s2892_s30 + $0xa0] sm:$0xff]  ;;  %v2964_v37 = vadd.s32 168, %v2884_v4  ;;  %v663_v38 = vand.u32 15, %v2916_v14 }
  0x16   : > { %484 = vst.msk [vmem:[#allocation2 + $0x98] sm:$0xff] %vm420_vm1, %v452_v8  ;;  %485 = vst.msk [vmem:[#allocation2 + $0xa0] sm:$0xff] %vm420_vm1, %v453_v9  ;;  %v457_v15 = vld [vmem:[%s2892_s30 + $0xa8] sm:$0xff]  ;;  %v458_v18 = vld [vmem:[%s2892_s30 + $0xb0] sm:$0xff]  ;;  %v2976_v42 = vadd.s32 176, %v2884_v4  ;;  %v2979_v43 = vadd.s32 184, %v2884_v4 }
  0x17   : > { %486 = vst.msk [vmem:[#allocation2 + $0xa8] sm:$0xff] %vm420_vm1, %v454_v10  ;;  %487 = vst.msk [vmem:[#allocation2 + $0xb0] sm:$0xff] %vm420_vm1, %v455_v12  ;;  %v429_v19 = vld [vmem:[%s385_s9] sm:$0xff]  ;;  %v430_v20 = vld [vmem:[%s385_s9 + $0x8] sm:$0xff]  ;;  %v670_v45 = vand.u32 15, %v2920_v16  ;;  %v677_v46 = vand.u32 15, %v2923_v17 }
  0x18   : > { %488 = vst.msk [vmem:[#allocation2 + $0xb8] sm:$0xff] %vm420_vm1, %v456_v13  ;;  %489 = vst.msk [vmem:[#allocation2 + $0xc0] sm:$0xff] %vm420_vm1, %v457_v15  ;;  %v432_v25 = vmul.f32 0.0, %v429_v19  ;;  %v433_v26 = vmul.f32 0.0, %v430_v20  ;;  %v436_v27 = vld [vmem:[%s2892_s30] sm:$0xff]  ;;  %v437_v28 = vld [vmem:[%s2892_s30 + $0x8] sm:$0xff] }
  0x19   : > { %490 = vst.msk [vmem:[#allocation2 + $0xc8] sm:$0xff] %vm420_vm1, %v458_v18  ;;  %v438_v29 = vld [vmem:[%s2892_s30 + $0x10] sm:$0xff]  ;;  %v439_v33 = vld [vmem:[%s2892_s30 + $0x18] sm:$0xff]  ;;  %v440_v34 = vld [vmem:[%s2892_s30 + $0x20] sm:$0xff]  ;;  %vm3011_vm2 = vcmp.gt.s32.totalorder %v656_v31, 0  ;;  %v3023_v9 = vadd.s32 32, %v2884_v4 }
  0x1a   : > { %468 = vst.msk [vmem:[#allocation2 + $0x18] sm:$0xff] %vm420_vm1, %v436_v27  ;;  %469 = vst.msk [vmem:[#allocation2 + $0x20] sm:$0xff] %vm420_vm1, %v437_v28  ;;  %v441_v35 = vld [vmem:[%s2892_s30 + $0x28] sm:$0xff]  ;;  %v442_v39 = vld [vmem:[%s2892_s30 + $0x30] sm:$0xff]  ;;  %vm3063_vm3 = vcmp.lt.s32.totalorder %v663_v38, 15  ;;  %vm3093_vm4 = vcmp.gt.s32.totalorder %v670_v45, 0 }
  0x1b   : > { %470 = vst.msk [vmem:[#allocation2 + $0x28] sm:$0xff] %vm420_vm1, %v438_v29  ;;  %434 = vst.msk [vmem:[#allocation2 + $0x8] sm:$0xff] %vm420_vm1, %v432_v25  ;;  %v459_v40 = vld [vmem:[%s2892_s30 + $0xb8] sm:$0xff]  ;;  %v460_v41 = vld [vmem:[%s2892_s30 + $0xc0] sm:$0xff]  ;;  %vm3117_vm5 = vcmp.lt.s32.totalorder %v677_v46, 15  ;;  %s2569_s25 = sadd.s32 240, %s2886_s27 }
  0x1c   : > { %435 = vst.msk [vmem:[#allocation2 + $0x10] sm:$0xff] %vm420_vm1, %v433_v26  ;;  %471 = vst.msk [vmem:[#allocation2 + $0x30] sm:$0xff] %vm420_vm1, %v439_v33  ;;  %v461_v48 = vld [vmem:[%s2892_s30 + $0xc8] sm:$0xff]  ;;  %v462_v49 = vld [vmem:[%s2892_s30 + $0xd0] sm:$0xff]  ;;  %s3802_s29 = scalar_lea.vmem %s4139_s2, %s2569_s25 }
  0x1d   : > { %472 = vst.msk [vmem:[#allocation2 + $0x38] sm:$0xff] %vm420_vm1, %v440_v34  ;;  %473 = vst.msk [vmem:[#allocation2 + $0x40] sm:$0xff] %vm420_vm1, %v441_v35  ;;  %v443_v50 = vld [vmem:[%s2892_s30 + $0x38] sm:$0xff]  ;;  %v1004_v51 = vld [vmem:[#allocation2 + $0x88] sm:$0xff] }
  0x1e   : > { %474 = vst.msk [vmem:[#allocation2 + $0x48] sm:$0xff] %vm420_vm1, %v442_v39  ;;  %491 = vst.msk [vmem:[#allocation2 + $0xd0] sm:$0xff] %vm420_vm1, %v459_v40  ;;  %v1005_v52 = vld [vmem:[#allocation2 + $0x90] sm:$0xff]  ;;  %v1006_v58 = vld [vmem:[#allocation2 + $0x98] sm:$0xff]  ;;  %v1041_v61 = vmul.f32 %v2939_v24, %v1004_v51  ;;  %v3016_v3 = vmul.f32 %v2952_v32, %v1004_v51 }
  0x1f   : > { %492 = vst.msk [vmem:[#allocation2 + $0xd8] sm:$0xff] %vm420_vm1, %v460_v41  ;;  %493 = vst.msk [vmem:[#allocation2 + $0xe0] sm:$0xff] %vm420_vm1, %v461_v48  ;;  %v1007_v59 = vld [vmem:[#allocation2 + $0xa0] sm:$0xff]  ;;  %v1008_v60 = vld [vmem:[#allocation2 + $0xa8] sm:$0xff]  ;;  %v1042_v62 = vmul.f32 %v2939_v24, %v1005_v52  ;;  %v3019_v5 = vmul.f32 %v2952_v32, %v1005_v52  ;;  %v1080_v6 = vmul.f32 %v2952_v32, %v1006_v58 }
  0x20   : > { %494 = vst.msk [vmem:[#allocation2 + $0xe8] sm:$0xff] %vm420_vm1, %v462_v49  ;;  %475 = vst.msk [vmem:[#allocation2 + $0x50] sm:$0xff] %vm420_vm1, %v443_v50  ;;  %v1009_v2 = vld [vmem:[#allocation2 + $0xb0] sm:$0xff]  ;;  %v1215_v7 = vld [vmem:[#allocation2 + $0x87] sm:$0xff]  ;;  %v3026_v10 = vmul.f32 %v2939_v24, %v1006_v58  ;;  %v3029_v11 = vmul.f32 %v2939_v24, %v1007_v59  ;;  %v3032_v12 = vmul.f32 %v2939_v24, %v1008_v60 }
  0x21   : > { %4150 = vst [vmem:[#allocation4_spill] sm:$0xff] %v3016_v3  ;;  %4151 = vst [vmem:[#allocation5_spill] sm:$0xff] %v3019_v5  ;;  %v1216_v8 = vld [vmem:[#allocation2 + $0x8f] sm:$0xff]  ;;  %v1081_v13 = vmul.f32 %v2952_v32, %v1007_v59  ;;  %v1217_v15 = vld [vmem:[#allocation2 + $0x97] sm:$0xff]  ;;  %v3036_v19 = vmul.f32 %v2939_v24, %v1009_v2  ;;  %v1112_v20 = vadd.f32 %v1080_v6, %v1041_v61 }
  0x22   : > { %4152 = vst [vmem:[#allocation6_spill] sm:$0xff] %v3023_v9  ;;  %v1218_v18 = vld [vmem:[#allocation2 + $0x9f] sm:$0xff]  ;;  %v1151_v25 = vmul.f32 %v2984_v44, %v1008_v60  ;;  %v1152_v26 = vmul.f32 %v2984_v44, %v1009_v2  ;;  %v1082_v28 = vmul.f32 %v2952_v32, %v1008_v60  ;;  %v1219_v31 = vld [vmem:[#allocation2 + $0xa7] sm:$0xff]  ;;  %v1220_v33 = vld [vmem:[#allocation2 + $0xaf] sm:$0xff]  ;;  %v1252_v34 = vmul.f32 %v2998_v53, %v1215_v7 }
  0x23   : > { %v3043_v27 = vld [vmem:[%s4140_s3 + $0x3] ss:$0 sm:$0xff]  ;;  %v1113_v29 = vadd.f32 %v1081_v13, %v1042_v62  ;;  %v1253_v35 = vmul.f32 %v2998_v53, %v1216_v8  ;;  %v3051_v39 = vld [vmem:[%s4140_s3 + $0x6] ss:$0 sm:$0xff]  ;;  %v1083_v40 = vmul.f32 %v2952_v32, %v1009_v2  ;;  %v1254_v48 = vmul.f32 %v2998_v53, %v1217_v15  ;;  %v3059_v50 = vld [vmem:[%s4140_s3 + $0x2] ss:$0 sm:$0xff] }
  0x24   : > { %v1183_v41 = vadd.f32 %v1151_v25, %v1112_v20  ;;  %v1255_v49 = vmul.f32 %v2998_v53, %v1218_v18  ;;  %v3068_v52 = vmul.f32 %v2998_v53, %v1219_v31  ;;  %v3071_v58 = vmul.f32 %v2998_v53, %v1220_v33  ;;  %v3075_v61 = vld [vmem:[#allocation2 + $0x89] sm:$0xff]  ;;  %v1427_v62 = vld [vmem:[#allocation2 + $0x91] sm:$0xff]  ;;  %v1428_v2 = vld [vmem:[#allocation2 + $0x99] sm:$0xff] }
  0x25   : > { %v1291_v59 = vmul.f32 %v3043_v27, %v1217_v15  ;;  %v1292_v60 = vmul.f32 %v3043_v27, %v1218_v18  ;;  %4155 = vst [vmem:[#allocation7_spill] sm:$0xff] %v3075_v61  ;;  %v1184_v6 = vadd.f32 %v1152_v26, %v1113_v29  ;;  %v3078_v14 = vmul.f32 %v3043_v27, %v1215_v7  ;;  %v1429_v20 = vld [vmem:[#allocation2 + $0xa1] sm:$0xff]  ;;  %v1430_v63 = vld [vmem:[#allocation2 + $0xa9] sm:$0xff]  ;;  %v1431_v57 = vld [vmem:[#allocation2 + $0xb1] sm:$0xff] }
  0x26   : > { %v1362_v38 = vmul.f32 %v3051_v39, %v1219_v31  ;;  %v1363_v13 = vmul.f32 %v3051_v39, %v1220_v33  ;;  %v3083_v25 = vmul.f32 %v3043_v27, %v1216_v8  ;;  %v1293_v15 = vmul.f32 %v3043_v27, %v1219_v31  ;;  %v3089_v26 = vld [vmem:[%s4140_s3 + $0x5] ss:$0 sm:$0xff]  ;;  %v3129_v47 = vld [vmem:[#allocation2 + $0xb7] sm:$0xff] }
  0x27   : > { %4156 = vst [vmem:[#allocation8_spill] sm:$0xff] %v3078_v14  ;;  %v1323_v0 = vadd.f32 %v1291_v59, %v1252_v34  ;;  %v1324_v18 = vadd.f32 %v1292_v60, %v1253_v35  ;;  %v1294_v8 = vmul.f32 %v3043_v27, %v1220_v33  ;;  %v1463_v29 = vmul.f32 %v3059_v50, %v3075_v61  ;;  %v3105_v35 = vld [vmem:[%s4140_s3 + $0x8] ss:$0 sm:$0xff]  ;;  %v3132_v14 = vld [vmem:[#allocation2 + $0xbf] sm:$0xff] }
  0x28   : > { %4157 = vst [vmem:[#allocation9_spill] sm:$0xff] %v3083_v25  ;;  %v1464_v31 = vmul.f32 %v3059_v50, %v1427_v62  ;;  %v1465_v34 = vmul.f32 %v3059_v50, %v1428_v2  ;;  %v1466_v45 = vmul.f32 %v3059_v50, %v1429_v20  ;;  %v3109_v60 = vmul.f32 %v3059_v50, %v1430_v63  ;;  %v464_v54 = vld [vmem:[%s2892_s30 + $0xe0] sm:$0xff] }
  0x29   : > { %v1394_v59 = vadd.f32 %v1362_v38, %v1323_v0  ;;  %v1395_v16 = vadd.f32 %v1363_v13, %v1324_v18  ;;  %v1502_v33 = vmul.f32 %v3089_v26, %v1428_v2  ;;  %v1503_v56 = vmul.f32 %v3089_v26, %v1429_v20  ;;  %v3121_v0 = vld [vmem:[#allocation2 + $0xb8] sm:$0xff]  ;;  %v3123_v38 = vld [vmem:[#allocation2 + $0xc0] sm:$0xff]  ;;  %496 = vst.msk [vmem:[#allocation2 + $0xf8] sm:$0xff] %vm420_vm1, %v464_v54 }
  0x2a   : > { %v1504_v62 = vmul.f32 %v3089_v26, %v1430_v63  ;;  %v1505_v55 = vmul.f32 %v3089_v26, %v1431_v57  ;;  %v1573_v13 = vmul.f32 %v3105_v35, %v1430_v63  ;;  %v1574_v2 = vmul.f32 %v3105_v35, %v1431_v57 }
  0x2b   : > { %v1701_v20 = vsel %vm3011_vm2, %v1394_v59, 0.0  ;;  %v1734_v18 = vadd.f32 %v1395_v16, %v1184_v6  ;;  %v1534_v22 = vadd.f32 %v1502_v33, %v1463_v29  ;;  %v1535_v17 = vadd.f32 %v1503_v56, %v1464_v31  ;;  %v988_v31 = vld [vmem:[#allocation2 + $0x8] sm:$0xff]  ;;  %v989_v33 = vld [vmem:[#allocation2 + $0x10] sm:$0xff] }
  0x2c   : > { %v1733_v46 = vadd.f32 %v1701_v20, %v1183_v41  ;;  %v1114_v25 = vadd.f32 %v1082_v28, %v3026_v10  ;;  %v1115_v5 = vadd.f32 %v1083_v40, %v3029_v11  ;;  %v1153_v63 = vmul.f32 %v2984_v44, %v3121_v0  ;;  %v3141_v41 = vld [vmem:[#allocation2 + $0xb9] sm:$0xff]  ;;  %v3143_v10 = vld [vmem:[#allocation2 + $0xc1] sm:$0xff] }
  0x2d   : > { %v1154_v3 = vmul.f32 %v2984_v44, %v3123_v38  ;;  %v1325_v1 = vadd.f32 %v1293_v15, %v1254_v48  ;;  %v1605_v59 = vadd.f32 %v1573_v13, %v1534_v22  ;;  %v1606_v6 = vadd.f32 %v1574_v2, %v1535_v17  ;;  %v444_v20 = vld [vmem:[%s2892_s30 + $0x40] sm:$0xff] }
  0x2e   : > { %v1326_v16 = vadd.f32 %v1294_v8, %v1255_v49  ;;  %v1364_v56 = vmul.f32 %v3051_v39, %v3129_v47  ;;  %v1185_v28 = vadd.f32 %v1153_v63, %v1114_v25  ;;  %v1365_v11 = vmul.f32 %v3051_v39, %v3132_v14  ;;  %v991_v25 = vld [vmem:[#allocation2 + $0x20] sm:$0xff]  ;;  %476 = vst.msk [vmem:[#allocation2 + $0x58] sm:$0xff] %vm420_vm1, %v444_v20  ;;  %v447_v20 = vld [vmem:[%s2892_s30 + $0x58] sm:$0xff] }
  0x2f   : > { %v1186_v29 = vadd.f32 %v1154_v3, %v1115_v5  ;;  %v1536_v40 = vadd.f32 %v1504_v62, %v1465_v34  ;;  %v1830_v22 = vsel %vm3063_vm3, %v1606_v6, 0.0  ;;  %v1861_v48 = vadd.f32 %v1733_v46, %v1605_v59  ;;  %v990_v5 = vld [vmem:[#allocation2 + $0x18] sm:$0xff]  ;;  %v992_v62 = vld [vmem:[#allocation2 + $0x28] sm:$0xff]  ;;  %479 = vst.msk [vmem:[#allocation2 + $0x70] sm:$0xff] %vm420_vm1, %v447_v20 }
  0x30   : > { %v1396_v49 = vadd.f32 %v1364_v56, %v1325_v1  ;;  %v1537_v15 = vadd.f32 %v1505_v55, %v1466_v45  ;;  %v1862_v8 = vadd.f32 %v1830_v22, %v1734_v18  ;;  %v1397_v13 = vadd.f32 %v1365_v11, %v1326_v16  ;;  %v993_v1 = vld [vmem:[#allocation2 + $0x30] sm:$0xff]  ;;  %v1199_v59 = vld [vmem:[#allocation2 + $0x7] sm:$0xff] }
  0x31   : > { %v1575_v2 = vmul.f32 %v3105_v35, %v3141_v41  ;;  %v1576_v3 = vmul.f32 %v3105_v35, %v3143_v10  ;;  %v3154_v34 = vmul.f32 %v3059_v50, %v1431_v57  ;;  %v1025_v55 = vmul.f32 %v2939_v24, %v988_v31  ;;  %v1200_v57 = vld [vmem:[#allocation2 + $0xf] sm:$0xff]  ;;  %v463_v31 = vld [vmem:[%s2892_s30 + $0xd8] sm:$0xff]  ;;  %v1413_v20 = vld [vmem:[#allocation2 + $0x21] sm:$0xff] }
  0x32   : > { %v1703_v51 = vsel %vm3093_vm4, %v1396_v49, 0.0  ;;  %v1026_v45 = vmul.f32 %v2939_v24, %v989_v33  ;;  %v1885_v18 = vpack.c.bf16 %v1862_v8, %v1861_v48  ;;  %v1736_v7 = vadd.f32 %v1397_v13, %v1186_v29  ;;  %v445_v11 = vld [vmem:[%s2892_s30 + $0x48] sm:$0xff]  ;;  %v1202_v8 = vld [vmem:[#allocation2 + $0x1f] sm:$0xff]  ;;  %495 = vst.msk [vmem:[#allocation2 + $0xf0] sm:$0xff] %vm420_vm1, %v463_v31 }
  0x33   : > { %v1607_v17 = vadd.f32 %v1575_v2, %v1536_v40  ;;  %v1608_v46 = vadd.f32 %v1576_v3, %v1537_v15  ;;  %v1735_v63 = vadd.f32 %v1703_v51, %v1185_v28  ;;  %v3163_v6 = vmul.f32 %v2939_v24, %v990_v5  ;;  %v446_v40 = vld [vmem:[%s2892_s30 + $0x50] sm:$0xff]  ;;  %477 = vst.msk [vmem:[#allocation2 + $0x60] sm:$0xff] %vm420_vm1, %v445_v11 }
  0x34   : > { %v3166_v16 = vmul.f32 %v2939_v24, %v991_v25  ;;  %v3169_v56 = vmul.f32 %v2939_v24, %v992_v62  ;;  %2607 = vmatprep.mubr.msk.bf16.mxu1 %vm420_vm1, %v1885_v18  ;;  %v4163_v33 = vand.u32 15, %v2884_v4  ;;  %v1064_v48 = vmul.f32 %v2952_v32, %v990_v5  ;;  %v1201_v15 = vld [vmem:[#allocation2 + $0x17] sm:$0xff]  ;;  %478 = vst.msk [vmem:[#allocation2 + $0x68] sm:$0xff] %vm420_vm1, %v446_v40  ;;  %v1204_v11 = vld [vmem:[#allocation2 + $0x2f] sm:$0xff]  ;;  %v448_v40 = vld [vmem:[%s2892_s30 + $0x60] sm:$0xff] }
  0x35   : > { %v1832_v28 = vsel %vm3117_vm5, %v1608_v46, 0.0  ;;  %v1863_v29 = vadd.f32 %v1735_v63, %v1607_v17  ;;  %v1065_v49 = vmul.f32 %v2952_v32, %v991_v25  ;;  %v3190_v2 = vmul.f32 %v2939_v24, %v993_v1  ;;  %v465_v25 = vld [vmem:[%s2892_s30 + $0xe8] sm:$0xff]  ;;  %v466_v51 = vld [vmem:[%s2892_s30 + $0xf0] sm:$0xff]  ;;  %480 = vst.msk [vmem:[#allocation2 + $0x78] sm:$0xff] %vm420_vm1, %v448_v40 }
  0x36   : > { %4162 = vst [vmem:[#allocation10_spill] sm:$0xff] %v3169_v56  ;;  %vm3179_vm6 = vcmp.gt.s32.totalorder %v4163_v33, 0  ;;  %v1864_v13 = vadd.f32 %v1832_v28, %v1736_v7  ;;  %v3193_v3 = vmul.f32 %v2952_v32, %v992_v62  ;;  %v1135_v5 = vmul.f32 %v2984_v44, %v992_v62  ;;  %v1203_v7 = vld [vmem:[#allocation2 + $0x27] sm:$0xff]  ;;  %497 = vst.msk [vmem:[#allocation2 + $0x100] sm:$0xff] %vm420_vm1, %v465_v25  ;;  %v1415_v40 = vld [vmem:[#allocation2 + $0x31] sm:$0xff] }
  0x37   : > { %4166 = vst [vmem:[#allocation11_spill] sm:$0xff] %v3190_v2  ;;  %v1067_v18 = vmul.f32 %v2952_v32, %v993_v1  ;;  %v1096_v17 = vadd.f32 %v1064_v48, %v1025_v55  ;;  %v1097_v46 = vadd.f32 %v1065_v49, %v1026_v45  ;;  %v1136_v63 = vmul.f32 %v2984_v44, %v993_v1  ;;  %v1410_v33 = vld [vmem:[#allocation2 + $0x9] sm:$0xff]  ;;  %v1411_v48 = vld [vmem:[#allocation2 + $0x11] sm:$0xff] }
  0x38   : > { %498 = vst.msk [vmem:[#allocation2 + $0x108] sm:$0xff] %vm420_vm1, %v466_v51  ;;  %v1886_v62 = vpack.c.bf16 %v1864_v13, %v1863_v29  ;;  %v4167_v31 = vand.u32 15, %v2930_v21  ;;  %v1236_v55 = vmul.f32 %v2998_v53, %v1199_v59  ;;  %v1237_v45 = vmul.f32 %v2998_v53, %v1200_v57  ;;  %v467_v49 = vld [vmem:[%s2892_s30 + $0xf8] sm:$0xff]  ;;  %v3290_v28 = vld [vmem:[#allocation2 + $0xd0] sm:$0xff] }
  0x39   : > { %v1238_v1 = vmul.f32 %v2998_v53, %v1201_v15  ;;  %v1167_v54 = vadd.f32 %v1135_v5, %v1096_v17  ;;  %v1168_v25 = vadd.f32 %v1136_v63, %v1097_v46  ;;  %v1239_v29 = vmul.f32 %v2998_v53, %v1202_v8  ;;  %v1412_v13 = vld [vmem:[#allocation2 + $0x19] sm:$0xff]  ;;  %499 = vst.msk [vmem:[#allocation2 + $0x110] sm:$0xff] %vm420_vm1, %v467_v49  ;;  %v1414_v63 = vld [vmem:[#allocation2 + $0x29] sm:$0xff] }
  0x3a   : > { %vm3208_vm7 = vcmp.lt.s32.totalorder %v4167_v31, 15  ;;  %v3219_v21 = vmul.f32 %v2998_v53, %v1203_v7  ;;  %2608 = vmatmul.mubr.msk.bf16.vlgmr.msra.gmra.mrb[0].mxu1 %vm420_vm1, %v1886_v62  ;;  %v3224_v59 = vmul.f32 %v2998_v53, %v1204_v11  ;;  %v1275_v57 = vmul.f32 %v3043_v27, %v1201_v15 }
  0x3b   : > { %v1276_v51 = vmul.f32 %v3043_v27, %v1202_v8  ;;  %v1277_v5 = vmul.f32 %v3043_v27, %v1203_v7  ;;  %v1346_v17 = vmul.f32 %v3051_v39, %v1203_v7  ;;  %v1347_v46 = vmul.f32 %v3051_v39, %v1204_v11 }
  0x3c   : > { %4170 = vst [vmem:[#allocation12_spill] sm:$0xff] %v3219_v21  ;;  %4171 = vst [vmem:[#allocation13_spill] sm:$0xff] %v3224_v59  ;;  %v1447_v31 = vmul.f32 %v3059_v50, %v1410_v33  ;;  %v1448_v62 = vmul.f32 %v3059_v50, %v1411_v48  ;;  %v4172_v49 = vand.u32 15, %v2934_v23  ;;  %v1278_v15 = vmul.f32 %v3043_v27, %v1204_v11 }
  0x3d   : > { %v1307_v8 = vadd.f32 %v1275_v57, %v1236_v55  ;;  %v1308_v59 = vadd.f32 %v1276_v51, %v1237_v45  ;;  %v1449_v7 = vmul.f32 %v3059_v50, %v1412_v13  ;;  %v1450_v21 = vmul.f32 %v3059_v50, %v1413_v20  ;;  %v3255_v45 = vld [vmem:[#allocation2 + $0x38] sm:$0xff] }
  0x3e   : > { %vm3235_vm8 = vcmp.gt.s32.totalorder %v4172_v49, 0  ;;  %v3243_v2 = vmul.f32 %v3059_v50, %v1414_v63  ;;  %v1486_v33 = vmul.f32 %v3089_v26, %v1412_v13  ;;  %v1487_v48 = vmul.f32 %v3089_v26, %v1413_v20 }
  0x3f   : > { %v1378_v23 = vadd.f32 %v1346_v17, %v1307_v8  ;;  %v1379_v49 = vadd.f32 %v1347_v46, %v1308_v59  ;;  %v1488_v56 = vmul.f32 %v3089_v26, %v1414_v63  ;;  %v1489_v9 = vmul.f32 %v3089_v26, %v1415_v40  ;;  %v3259_v17 = vld [vmem:[#allocation2 + $0x40] sm:$0xff]  ;;  %v3261_v59 = vld [vmem:[#allocation2 + $0x37] sm:$0xff] }
  0x40   : > { %4175 = vst [vmem:[#allocation14_spill] sm:$0xff] %v3243_v2  ;;  %v4176_v11 = vand.u32 15, %v2946_v30  ;;  %v1518_v57 = vadd.f32 %v1486_v33, %v1447_v31  ;;  %v1519_v51 = vadd.f32 %v1487_v48, %v1448_v62  ;;  %v1557_v13 = vmul.f32 %v3105_v35, %v1414_v63  ;;  %v3268_v2 = vld [vmem:[#allocation2 + $0x3f] sm:$0xff] }
  0x41   : > { %v1558_v20 = vmul.f32 %v3105_v35, %v1415_v40  ;;  %v1685_v46 = vsel %vm3179_vm6, %v1378_v23, 0.0  ;;  %v1718_v30 = vadd.f32 %v1379_v49, %v1168_v25  ;;  %v1098_v8 = vadd.f32 %v3193_v3, %v3163_v6  ;;  %v3276_v23 = vld [vmem:[#allocation2 + $0x39] sm:$0xff]  ;;  %v3278_v6 = vld [vmem:[#allocation2 + $0x41] sm:$0xff] }
  0x42   : > { %vm3251_vm9 = vcmp.lt.s32.totalorder %v4176_v11, 15  ;;  %v1099_v11 = vadd.f32 %v1067_v18, %v3166_v16  ;;  %v1589_v31 = vadd.f32 %v1557_v13, %v1518_v57  ;;  %v1717_v63 = vadd.f32 %v1685_v46, %v1167_v54 }
  0x43   : > { %v1590_v62 = vadd.f32 %v1558_v20, %v1519_v51  ;;  %v1137_v33 = vmul.f32 %v2984_v44, %v3255_v45  ;;  %v1138_v48 = vmul.f32 %v2984_v44, %v3259_v17  ;;  %v1309_v4 = vadd.f32 %v1277_v5, %v1238_v1  ;;  %v3288_v20 = vld [vmem:[#allocation2 + $0xc8] sm:$0xff] }
  0x44   : > { %v1310_v22 = vadd.f32 %v1278_v15, %v1239_v29  ;;  %v1348_v25 = vmul.f32 %v3051_v39, %v3261_v59  ;;  %v1845_v3 = vadd.f32 %v1717_v63, %v1589_v31  ;;  %v1349_v54 = vmul.f32 %v3051_v39, %v3268_v2  ;;  %v3303_v31 = vld [vmem:[#allocation2 + $0xc7] sm:$0xff]  ;;  %v3314_v63 = vld [vmem:[#allocation2 + $0xcf] sm:$0xff] }
  0x45   : > { %v1814_v16 = vsel %vm3208_vm7, %v1590_v62, 0.0  ;;  %v1169_v18 = vadd.f32 %v1137_v33, %v1098_v8  ;;  %v1170_v57 = vadd.f32 %v1138_v48, %v1099_v11  ;;  %v1520_v1 = vadd.f32 %v1488_v56, %v1449_v7 }
  0x46   : > { %v1846_v49 = vadd.f32 %v1814_v16, %v1718_v30  ;;  %v1380_v51 = vadd.f32 %v1348_v25, %v1309_v4  ;;  %v1381_v29 = vadd.f32 %v1349_v54, %v1310_v22  ;;  %v1521_v5 = vadd.f32 %v1489_v9, %v1450_v21 }
  0x47   : > { %v1559_v15 = vmul.f32 %v3105_v35, %v3276_v23  ;;  %v1560_v13 = vmul.f32 %v3105_v35, %v3278_v6  ;;  %v3293_v46 = vmul.f32 %v3059_v50, %v1415_v40  ;;  %v4179_v56 = vand.u32 15, %v2961_v36 }
  0x48   : > { %v1877_v8 = vpack.c.bf16 %v1846_v49, %v1845_v3  ;;  %v1687_v4 = vsel %vm3235_vm8, %v1380_v51, 0.0  ;;  %v1720_v11 = vadd.f32 %v1381_v29, %v1170_v57  ;;  %v1084_v40 = vmul.f32 %v2952_v32, %v3121_v0  ;;  %v3326_v49 = vld [vmem:[#allocation2 + $0xc9] sm:$0xff] }
  0x49   : > { %vm3299_vm10 = vcmp.gt.s32.totalorder %v4179_v56, 0  ;;  %v1591_v21 = vadd.f32 %v1559_v15, %v1520_v1  ;;  %v1592_v7 = vadd.f32 %v1560_v13, %v1521_v5  ;;  %v1719_v30 = vadd.f32 %v1687_v4, %v1169_v18  ;;  %v3332_v1 = vld [vmem:[#allocation2 + $0xd1] sm:$0xff] }
  0x4a   : > { %2591 = vmatprep.mubr.msk.bf16.mxu0 %vm420_vm1, %v1877_v8  ;;  %v1085_v61 = vmul.f32 %v2952_v32, %v3123_v38  ;;  %v1155_v36 = vmul.f32 %v2984_v44, %v3288_v20  ;;  %v1156_v62 = vmul.f32 %v2984_v44, %v3290_v28  ;;  %v1295_v22 = vmul.f32 %v3043_v27, %v3129_v47 }
  0x4b   : > { %v1816_v33 = vsel %vm3251_vm9, %v1592_v7, 0.0  ;;  %v1847_v48 = vadd.f32 %v1719_v30, %v1591_v21  ;;  %v1296_v25 = vmul.f32 %v3043_v27, %v3132_v14  ;;  %v1116_v3 = vadd.f32 %v1084_v40, %v3032_v12  ;;  %v3359_v40 = vld [vmem:[#allocation2 + $0xe0] sm:$0xff] }
  0x4c   : > { %v1848_v16 = vadd.f32 %v1816_v33, %v1720_v11  ;;  %v1117_v18 = vadd.f32 %v1085_v61, %v3036_v19  ;;  %v1366_v54 = vmul.f32 %v3051_v39, %v3303_v31  ;;  %v1327_v55 = vadd.f32 %v1295_v22, %v3068_v52  ;;  %v3357_v11 = vld [vmem:[#allocation2 + $0xd8] sm:$0xff] }
  0x4d   : > { %v1328_v57 = vadd.f32 %v1296_v25, %v3071_v58  ;;  %v1367_v51 = vmul.f32 %v3051_v39, %v3314_v63  ;;  %v1506_v29 = vmul.f32 %v3089_v26, %v3141_v41  ;;  %v1187_v5 = vadd.f32 %v1155_v36, %v1116_v3  ;;  %v3381_v3 = vld [vmem:[#allocation2 + $0xd7] sm:$0xff] }
  0x4e   : > { %v1878_v12 = vpack.c.bf16 %v1848_v16, %v1847_v48  ;;  %v1188_v19 = vadd.f32 %v1156_v62, %v1117_v18  ;;  %v1507_v15 = vmul.f32 %v3089_v26, %v3143_v10  ;;  %v1398_v13 = vadd.f32 %v1366_v54, %v1327_v55 }
  0x4f   : > { %v1399_v8 = vadd.f32 %v1367_v51, %v1328_v57  ;;  %v1538_v52 = vadd.f32 %v1506_v29, %v3109_v60  ;;  %v1577_v58 = vmul.f32 %v3105_v35, %v3326_v49  ;;  %v4182_v4 = vand.u32 15, %v2964_v37  ;;  %v4197_v60 = vld [vmem:[#allocation10_spill] sm:$0xff] }
  0x50   : > { %2592 = vmatmul.mubr.msk.bf16.vlgmr.msra.gmra.mrb[0].mxu0 %vm420_vm1, %v1878_v12  ;;  %v1539_v21 = vadd.f32 %v1507_v15, %v3154_v34  ;;  %v1578_v7 = vmul.f32 %v3105_v35, %v3332_v1  ;;  %v4185_v30 = vand.u32 15, %v2976_v42  ;;  %v1705_v61 = vsel %vm3299_vm10, %v1398_v13, 0.0 }
  0x51   : > { %vm3344_vm11 = vcmp.lt.s32.totalorder %v4182_v4, 15  ;;  %v1609_v37 = vadd.f32 %v1577_v58, %v1538_v52  ;;  %v1738_v36 = vadd.f32 %v1399_v8, %v1188_v19  ;;  %v1047_v34 = vmul.f32 %v2939_v24, %v3121_v0  ;;  %v3395_v19 = vld [vmem:[#allocation2 + $0xd9] sm:$0xff]  ;;  %v3401_v8 = vld [vmem:[#allocation2 + $0xe1] sm:$0xff] }
  0x52   : > { %vm3353_vm12 = vcmp.gt.s32.totalorder %v4185_v30, 0  ;;  %v1610_v62 = vadd.f32 %v1578_v7, %v1539_v21  ;;  %v1737_v33 = vadd.f32 %v1705_v61, %v1187_v5  ;;  %v1048_v42 = vmul.f32 %v2939_v24, %v3123_v38  ;;  %v3383_v38 = vld [vmem:[#allocation2 + $0xdf] sm:$0xff] }
  0x53   : > { %v1086_v48 = vmul.f32 %v2952_v32, %v3288_v20  ;;  %v4188_v22 = vand.u32 15, %v2979_v43  ;;  %v1087_v9 = vmul.f32 %v2952_v32, %v3290_v28  ;;  %v1157_v0 = vmul.f32 %v2984_v44, %v3357_v11 }
  0x54   : > { %v1158_v16 = vmul.f32 %v2984_v44, %v3359_v40  ;;  %v1258_v43 = vmul.f32 %v2998_v53, %v3129_v47  ;;  %v1834_v18 = vsel %vm3344_vm11, %v1610_v62, 0.0  ;;  %v1865_v54 = vadd.f32 %v1737_v33, %v1609_v37 }
  0x55   : > { %vm3371_vm13 = vcmp.lt.s32.totalorder %v4188_v22, 15  ;;  %v1118_v55 = vadd.f32 %v1086_v48, %v1047_v34  ;;  %v1259_v57 = vmul.f32 %v2998_v53, %v3132_v14  ;;  %v1866_v51 = vadd.f32 %v1834_v18, %v1738_v36  ;;  %v4191_v34 = vld [vmem:[#allocation3_spill] sm:$0xff]  ;;  %v3418_v22 = vld [vmem:[#allocation2 + $0x48] sm:$0xff] }
  0x56   : > { %v1119_v29 = vadd.f32 %v1087_v9, %v1048_v42  ;;  %v1297_v12 = vmul.f32 %v3043_v27, %v3303_v31  ;;  %v1298_v5 = vmul.f32 %v3043_v27, %v3314_v63  ;;  %v1368_v47 = vmul.f32 %v3051_v39, %v3381_v3  ;;  %v4192_v42 = vld [vmem:[#allocation6_spill] sm:$0xff]  ;;  %v3424_v18 = vld [vmem:[#allocation2 + $0x50] sm:$0xff] }
  0x57   : > { %v1189_v15 = vadd.f32 %v1157_v0, %v1118_v55  ;;  %v1369_v13 = vmul.f32 %v3051_v39, %v3383_v38  ;;  %v1469_v14 = vmul.f32 %v3059_v50, %v3141_v41  ;;  %v1887_v52 = vpack.c.bf16 %v1866_v51, %v1865_v54 }
  0x58   : > { %v1190_v58 = vadd.f32 %v1158_v16, %v1119_v29  ;;  %v1329_v4 = vadd.f32 %v1297_v12, %v1258_v43  ;;  %v1330_v56 = vadd.f32 %v1298_v5, %v1259_v57  ;;  %v1470_v21 = vmul.f32 %v3059_v50, %v3143_v10  ;;  %v3432_v12 = vld [vmem:[#allocation2 + $0x47] sm:$0xff] }
  0x59   : > { %v1508_v7 = vmul.f32 %v3089_v26, %v3326_v49  ;;  %v1509_v30 = vmul.f32 %v3089_v26, %v3332_v1  ;;  %v1579_v37 = vmul.f32 %v3105_v35, %v3395_v19  ;;  %2611 = vmatprep.mubr.msk.bf16.mxu1 %vm420_vm1, %v1887_v52  ;;  %v1580_v36 = vmul.f32 %v3105_v35, %v3401_v8 }
  0x5a   : > { %v1400_v61 = vadd.f32 %v1368_v47, %v1329_v4  ;;  %v1401_v41 = vadd.f32 %v1369_v13, %v1330_v56  ;;  %v513_v62 = vadd.s32 40, %v4191_v34  ;;  %v572_v48 = vand.u32 15, %v4192_v42  ;;  %v4198_v13 = vld [vmem:[#allocation11_spill] sm:$0xff] }
  0x5b   : > { %v1540_v33 = vadd.f32 %v1508_v7, %v1469_v14  ;;  %v1541_v10 = vadd.f32 %v1509_v30, %v1470_v21  ;;  %v1068_v9 = vmul.f32 %v2952_v32, %v3255_v45  ;;  %v1069_v54 = vmul.f32 %v2952_v32, %v3259_v17  ;;  %v3450_v7 = vld [vmem:[#allocation2 + $0x49] sm:$0xff] }
  0x5c   : > { %v1707_v0 = vsel %vm3353_vm12, %v1400_v61, 0.0  ;;  %v1740_v16 = vadd.f32 %v1401_v41, %v1190_v58  ;;  %v579_v43 = vand.u32 15, %v513_v62  ;;  %vm3428_vm14 = vcmp.gt.s32.totalorder %v572_v48, 0  ;;  %v3442_v58 = vld [vmem:[#allocation2 + $0x4f] sm:$0xff]  ;;  %v4199_v62 = vld [vmem:[#allocation12_spill] sm:$0xff] }
  0x5d   : > { %v1611_v55 = vadd.f32 %v1579_v37, %v1540_v33  ;;  %v1612_v57 = vadd.f32 %v1580_v36, %v1541_v10  ;;  %v1739_v51 = vadd.f32 %v1707_v0, %v1189_v15  ;;  %v1100_v47 = vadd.f32 %v1068_v9, %v4197_v60  ;;  %v3456_v36 = vld [vmem:[#allocation2 + $0x51] sm:$0xff]  ;;  %v4200_v9 = vld [vmem:[#allocation13_spill] sm:$0xff] }
  0x5e   : > { %vm3434_vm15 = vcmp.lt.s32.totalorder %v579_v43, 15  ;;  %v1101_v14 = vadd.f32 %v1069_v54, %v4198_v13  ;;  %v1139_v52 = vmul.f32 %v2984_v44, %v3418_v22  ;;  %v1140_v56 = vmul.f32 %v2984_v44, %v3424_v18 }
  0x5f   : > { %v1836_v15 = vsel %vm3371_vm13, %v1612_v57, 0.0  ;;  %v1867_v4 = vadd.f32 %v1739_v51, %v1611_v55  ;;  %v1279_v21 = vmul.f32 %v3043_v27, %v3261_v59  ;;  %v1280_v61 = vmul.f32 %v3043_v27, %v3268_v2  ;;  %v4201_v55 = vld [vmem:[#allocation14_spill] sm:$0xff] }
  0x60   : > { %v1868_v30 = vadd.f32 %v1836_v15, %v1740_v16  ;;  %v1171_v37 = vadd.f32 %v1139_v52, %v1100_v47  ;;  %v1350_v41 = vmul.f32 %v3051_v39, %v3432_v12  ;;  %v1172_v25 = vadd.f32 %v1140_v56, %v1101_v14  ;;  %v3475_v52 = vld [vmem:[#allocation2 + $0x58] sm:$0xff] }
  0x61   : > { %v1311_v33 = vadd.f32 %v1279_v21, %v4199_v62  ;;  %v1351_v10 = vmul.f32 %v3051_v39, %v3442_v58  ;;  %v1490_v42 = vmul.f32 %v3089_v26, %v3276_v23  ;;  %v1312_v0 = vadd.f32 %v1280_v61, %v4200_v9 }
  0x62   : > { %v1888_v48 = vpack.c.bf16 %v1868_v30, %v1867_v4  ;;  %v1491_v16 = vmul.f32 %v3089_v26, %v3278_v6  ;;  %v1561_v43 = vmul.f32 %v3105_v35, %v3450_v7  ;;  %v1562_v51 = vmul.f32 %v3105_v35, %v3456_v36  ;;  %v3481_v30 = vld [vmem:[#allocation2 + $0x60] sm:$0xff] }
  0x63   : > { %v1382_v54 = vadd.f32 %v1350_v41, %v1311_v33  ;;  %v1522_v57 = vadd.f32 %v1490_v42, %v4201_v55  ;;  %v514_v60 = vadd.s32 48, %v4191_v34  ;;  %v1383_v47 = vadd.f32 %v1351_v10, %v1312_v0  ;;  %v3505_v0 = vld [vmem:[#allocation2 + $0x5f] sm:$0xff] }
  0x64   : > { %2612 = vmatmul.mubr.msk.bf16.gmra.mrb[4].mxu1 %vm420_vm1, %v1888_v48  ;;  %v1523_v13 = vadd.f32 %v1491_v16, %v3293_v46  ;;  %v515_v14 = vadd.s32 56, %v4191_v34  ;;  %v1031_v15 = vmul.f32 %v2939_v24, %v3255_v45  ;;  %v1032_v61 = vmul.f32 %v2939_v24, %v3259_v17  ;;  %v3495_v48 = vld [vmem:[#allocation2 + $0x57] sm:$0xff] }
  0x65   : > { %v1593_v4 = vadd.f32 %v1561_v43, %v1522_v57  ;;  %v1689_v56 = vsel %vm3428_vm14, %v1382_v54, 0.0  ;;  %v586_v21 = vand.u32 15, %v514_v60  ;;  %v1722_v46 = vadd.f32 %v1383_v47, %v1172_v25  ;;  %v3517_v47 = vld [vmem:[#allocation2 + $0x59] sm:$0xff] }
  0x66   : > { %v1594_v41 = vadd.f32 %v1562_v51, %v1523_v13  ;;  %v1721_v62 = vadd.f32 %v1689_v56, %v1171_v37  ;;  %v593_v33 = vand.u32 15, %v515_v14  ;;  %v1070_v45 = vmul.f32 %v2952_v32, %v3418_v22  ;;  %v3519_v13 = vld [vmem:[#allocation2 + $0x61] sm:$0xff] }
  0x67   : > { %vm3485_vm0 = vcmp.gt.s32.totalorder %v586_v21, 0  ;;  %v1071_v29 = vmul.f32 %v2952_v32, %v3424_v18  ;;  %v1141_v42 = vmul.f32 %v2984_v44, %v3475_v52  ;;  %v1142_v9 = vmul.f32 %v2984_v44, %v3481_v30 }
  0x68   : > { %v1818_v17 = vsel %vm3434_vm15, %v1594_v41, 0.0  ;;  %v1849_v37 = vadd.f32 %v1721_v62, %v1593_v4  ;;  %vm3499_vm2 = vcmp.lt.s32.totalorder %v593_v33, 15  ;;  %v1102_v43 = vadd.f32 %v1070_v45, %v1031_v15 }
  0x69   : > { %v1850_v16 = vadd.f32 %v1818_v17, %v1722_v46  ;;  %v1103_v54 = vadd.f32 %v1071_v29, %v1032_v61  ;;  %v1242_v55 = vmul.f32 %v2998_v53, %v3261_v59  ;;  %v1243_v5 = vmul.f32 %v2998_v53, %v3268_v2 }
  0x6a   : > { %v1281_v57 = vmul.f32 %v3043_v27, %v3432_v12  ;;  %v1282_v51 = vmul.f32 %v3043_v27, %v3442_v58  ;;  %v1352_v60 = vmul.f32 %v3051_v39, %v3495_v48  ;;  %v1173_v15 = vadd.f32 %v1141_v42, %v1102_v43 }
  0x6b   : > { %v1879_v14 = vpack.c.bf16 %v1850_v16, %v1849_v37  ;;  %v1174_v4 = vadd.f32 %v1142_v9, %v1103_v54  ;;  %v1353_v59 = vmul.f32 %v3051_v39, %v3505_v0  ;;  %v1453_v21 = vmul.f32 %v3059_v50, %v3276_v23  ;;  %v3538_v37 = vld [vmem:[#allocation2 + $0xe8] sm:$0xff] }
  0x6c   : > { %v1313_v2 = vadd.f32 %v1281_v57, %v1242_v55  ;;  %v1314_v56 = vadd.f32 %v1282_v51, %v1243_v5  ;;  %v1454_v61 = vmul.f32 %v3059_v50, %v3278_v6  ;;  %v1492_v41 = vmul.f32 %v3089_v26, %v3450_v7  ;;  %v3546_v57 = vld [vmem:[#allocation2 + $0xf0] sm:$0xff] }
  0x6d   : > { %2595 = vmatprep.mubr.msk.bf16.mxu0 %vm420_vm1, %v1879_v14  ;;  %v1493_v62 = vmul.f32 %v3089_v26, %v3456_v36  ;;  %v1563_v46 = vmul.f32 %v3105_v35, %v3517_v47  ;;  %v1564_v33 = vmul.f32 %v3105_v35, %v3519_v13  ;;  %v532_v23 = vadd.s32 192, %v4191_v34 }
  0x6e   : > { %v1384_v45 = vadd.f32 %v1352_v60, %v1313_v2  ;;  %v1385_v29 = vadd.f32 %v1353_v59, %v1314_v56  ;;  %v533_v6 = vadd.s32 200, %v4191_v34  ;;  %v1524_v42 = vadd.f32 %v1492_v41, %v1453_v21  ;;  %v4206_v2 = vld [vmem:[#allocation7_spill] sm:$0xff] }
  0x6f   : > { %v1525_v17 = vadd.f32 %v1493_v62, %v1454_v61  ;;  %v1049_v9 = vmul.f32 %v2939_v24, %v3288_v20  ;;  %v1050_v16 = vmul.f32 %v2939_v24, %v3290_v28  ;;  %v712_v55 = vand.u32 15, %v532_v23  ;;  %v3572_v62 = vld [vmem:[#allocation2 + $0xef] sm:$0xff] }
  0x70   : > { %v1691_v43 = vsel %vm3485_vm0, %v1384_v45, 0.0  ;;  %v1724_v54 = vadd.f32 %v1385_v29, %v1174_v4  ;;  %v719_v5 = vand.u32 15, %v533_v6  ;;  %v1595_v51 = vadd.f32 %v1563_v46, %v1524_v42  ;;  %v3562_v4 = vld [vmem:[#allocation2 + $0xe7] sm:$0xff] }
  0x71   : > { %v1596_v60 = vadd.f32 %v1564_v33, %v1525_v17  ;;  %v1723_v14 = vadd.f32 %v1691_v43, %v1173_v15  ;;  %v1088_v59 = vmul.f32 %v2952_v32, %v3357_v11  ;;  %v3552_v20 = vmul.f32 %v3089_v26, %v4206_v2  ;;  %v3584_v42 = vld [vmem:[#allocation2 + $0xe9] sm:$0xff]  ;;  %v3586_v17 = vld [vmem:[#allocation2 + $0xf1] sm:$0xff] }
  0x72   : > { %vm3554_vm3 = vcmp.gt.s32.totalorder %v712_v55, 0  ;;  %v1089_v28 = vmul.f32 %v2952_v32, %v3359_v40  ;;  %v1159_v10 = vmul.f32 %v2984_v44, %v3538_v37  ;;  %vm3566_vm4 = vcmp.lt.s32.totalorder %v719_v5, 15 }
  0x73   : > { %v1820_v15 = vsel %vm3499_vm2, %v1596_v60, 0.0  ;;  %v1851_v56 = vadd.f32 %v1723_v14, %v1595_v51  ;;  %v1120_v61 = vadd.f32 %v1088_v59, %v1049_v9  ;;  %v1160_v41 = vmul.f32 %v2984_v44, %v3546_v57 }
  0x74   : > { %v1852_v32 = vadd.f32 %v1820_v15, %v1724_v54  ;;  %v1121_v46 = vadd.f32 %v1089_v28, %v1050_v16  ;;  %v1260_v33 = vmul.f32 %v2998_v53, %v3303_v31  ;;  %v1261_v25 = vmul.f32 %v2998_v53, %v3314_v63 }
  0x75   : > { %v1191_v45 = vadd.f32 %v1159_v10, %v1120_v61  ;;  %v1299_v29 = vmul.f32 %v3043_v27, %v3381_v3  ;;  %v1300_v23 = vmul.f32 %v3043_v27, %v3383_v38  ;;  %v1370_v6 = vmul.f32 %v3051_v39, %v3562_v4  ;;  %v3607_v61 = vld [vmem:[#allocation2 + $0x100] sm:$0xff] }
  0x76   : > { %v1880_v9 = vpack.c.bf16 %v1852_v32, %v1851_v56  ;;  %v1192_v16 = vadd.f32 %v1160_v41, %v1121_v46  ;;  %v1371_v31 = vmul.f32 %v3051_v39, %v3572_v62  ;;  %v1471_v63 = vmul.f32 %v3059_v50, %v3326_v49  ;;  %v3605_v56 = vld [vmem:[#allocation2 + $0xf8] sm:$0xff]  ;;  %v3612_v41 = vld [vmem:[%s4140_s3 + $0x1] ss:$0 sm:$0xff] }
  0x77   : > { %v1331_v43 = vadd.f32 %v1299_v29, %v1260_v33  ;;  %v1332_v54 = vadd.f32 %v1300_v23, %v1261_v25  ;;  %v1472_v55 = vmul.f32 %v3059_v50, %v3332_v1  ;;  %v1510_v5 = vmul.f32 %v3089_v26, %v3395_v19 }
  0x78   : > { %2596 = vmatmul.mubr.msk.bf16.gmra.mrb[4].mxu0 %vm420_vm1, %v1880_v9  ;;  %v1511_v51 = vmul.f32 %v3089_v26, %v3401_v8  ;;  %v1581_v60 = vmul.f32 %v3105_v35, %v3584_v42  ;;  %v1582_v14 = vmul.f32 %v3105_v35, %v3586_v17  ;;  %v534_v49 = vadd.s32 208, %v4191_v34 }
  0x79   : > { %v1402_v59 = vadd.f32 %v1370_v6, %v1331_v43  ;;  %v1403_v2 = vadd.f32 %v1371_v31, %v1332_v54  ;;  %v1542_v28 = vadd.f32 %v1510_v5, %v1471_v63  ;;  %v535_v1 = vadd.s32 216, %v4191_v34  ;;  %v3627_v63 = vld [vmem:[%s4140_s3 + $0x4] ss:$0 sm:$0xff]  ;;  %v3641_v43 = vld [vmem:[#allocation2 + $0xf7] sm:$0xff] }
  0x7a   : > { %v1543_v10 = vadd.f32 %v1511_v51, %v1472_v55  ;;  %v726_v15 = vand.u32 15, %v534_v49  ;;  %v1051_v32 = vmul.f32 %v3612_v41, %v3357_v11  ;;  %v1052_v46 = vmul.f32 %v3612_v41, %v3359_v40  ;;  %v3643_v54 = vld [vmem:[#allocation2 + $0xff] sm:$0xff] }
  0x7b   : > { %v1613_v33 = vadd.f32 %v1581_v60, %v1542_v28  ;;  %v1709_v25 = vsel %vm3554_vm3, %v1402_v59, 0.0  ;;  %v1742_v29 = vadd.f32 %v1403_v2, %v1192_v16  ;;  %v733_v23 = vand.u32 15, %v535_v1 }
  0x7c   : > { %v1614_v6 = vadd.f32 %v1582_v14, %v1543_v10  ;;  %v1741_v9 = vadd.f32 %v1709_v25, %v1191_v45  ;;  %vm3620_vm5 = vcmp.gt.s32.totalorder %v726_v15, 0  ;;  %v1090_v11 = vmul.f32 %v3627_v63, %v3538_v37  ;;  %v3659_v10 = vld [vmem:[#allocation2 + $0xf9] sm:$0xff] }
  0x7d   : > { %vm3631_vm6 = vcmp.lt.s32.totalorder %v733_v23, 15  ;;  %v1091_v24 = vmul.f32 %v3627_v63, %v3546_v57  ;;  %v1161_v45 = vmul.f32 %v2984_v44, %v3605_v56  ;;  %v1162_v16 = vmul.f32 %v2984_v44, %v3607_v61 }
  0x7e   : > { %v1838_v55 = vsel %vm3566_vm4, %v1614_v6, 0.0  ;;  %v1869_v5 = vadd.f32 %v1741_v9, %v1613_v33  ;;  %v1122_v51 = vadd.f32 %v1090_v11, %v1051_v32  ;;  %v1262_v60 = vmul.f32 %v2998_v53, %v3381_v3  ;;  %v3661_v3 = vld [vmem:[#allocation2 + $0x101] sm:$0xff] }
  0x7f   : > { %v1870_v14 = vadd.f32 %v1838_v55, %v1742_v29  ;;  %v1123_v49 = vadd.f32 %v1091_v24, %v1052_v46  ;;  %v1263_v59 = vmul.f32 %v2998_v53, %v3383_v38  ;;  %v1301_v44 = vmul.f32 %v3043_v27, %v3562_v4 }
  0x80   : > { %v1193_v2 = vadd.f32 %v1161_v45, %v1122_v51  ;;  %v1302_v28 = vmul.f32 %v3043_v27, %v3572_v62  ;;  %v1372_v21 = vmul.f32 %v3051_v39, %v3641_v43  ;;  %v1373_v1 = vmul.f32 %v3051_v39, %v3643_v54  ;;  %v3680_v45 = vld [vmem:[#allocation2 + $0x68] sm:$0xff] }
  0x81   : > { %v1889_v15 = vpack.c.bf16 %v1870_v14, %v1869_v5  ;;  %v1194_v32 = vadd.f32 %v1162_v16, %v1123_v49  ;;  %v1333_v53 = vadd.f32 %v1301_v44, %v1262_v60  ;;  %v1473_v38 = vmul.f32 %v3059_v50, %v3395_v19  ;;  %v3682_v16 = vld [vmem:[#allocation2 + $0x70] sm:$0xff] }
  0x82   : > { %v1334_v46 = vadd.f32 %v1302_v28, %v1263_v59  ;;  %v1474_v27 = vmul.f32 %v3059_v50, %v3401_v8  ;;  %v1512_v33 = vmul.f32 %v3089_v26, %v3584_v42  ;;  %v1513_v39 = vmul.f32 %v3089_v26, %v3586_v17 }
  0x83   : > { %2615 = vmatprep.mubr.msk.bf16.mxu1 %vm420_vm1, %v1889_v15  ;;  %v1404_v25 = vadd.f32 %v1372_v21, %v1333_v53  ;;  %v1583_v29 = vmul.f32 %v3105_v35, %v3659_v10  ;;  %v1584_v23 = vmul.f32 %v3105_v35, %v3661_v3  ;;  %v516_v19 = vadd.s32 64, %v4191_v34  ;;  %v3707_v15 = vld [vmem:[#allocation2 + $0x67] sm:$0xff] }
  0x84   : > { %v1405_v6 = vadd.f32 %v1373_v1, %v1334_v46  ;;  %v1544_v9 = vadd.f32 %v1512_v33, %v1473_v38  ;;  %v1545_v50 = vadd.f32 %v1513_v39, %v1474_v27  ;;  %v517_v8 = vadd.s32 72, %v4191_v34  ;;  %v3713_v46 = vld [vmem:[#allocation2 + $0x6f] sm:$0xff]  ;;  %v3718_v27 = vld [vmem:[%s4140_s3] ss:$0 sm:$0xff] }
  0x85   : > { %v1711_v11 = vsel %vm3620_vm5, %v1404_v25, 0.0  ;;  %v600_v24 = vand.u32 15, %v516_v19  ;;  %v1033_v55 = vmul.f32 %v3612_v41, %v3418_v22  ;;  %v1034_v5 = vmul.f32 %v3612_v41, %v3424_v18  ;;  %v3701_v18 = vld [vmem:[%s4140_s3 + $0x7] ss:$0 sm:$0xff]  ;;  %v3727_v25 = vld [vmem:[%s4140_s3 + $0x3] ss:$0 sm:$0xff] }
  0x86   : > { %v1615_v51 = vadd.f32 %v1583_v29, %v1544_v9  ;;  %v1616_v60 = vadd.f32 %v1584_v23, %v1545_v50  ;;  %v1743_v14 = vadd.f32 %v1711_v11, %v1193_v2  ;;  %v1744_v49 = vadd.f32 %v1405_v6, %v1194_v32  ;;  %v3733_v19 = vld [vmem:[#allocation2 + $0x69] sm:$0xff] }
  0x87   : > { %v607_v59 = vand.u32 15, %v517_v8  ;;  %vm3688_vm7 = vcmp.gt.s32.totalorder %v600_v24, 0  ;;  %v1072_v31 = vmul.f32 %v3627_v63, %v3475_v52  ;;  %v1073_v28 = vmul.f32 %v3627_v63, %v3481_v30  ;;  %v3742_v8 = vld [vmem:[#allocation2 + $0x71] sm:$0xff] }
  0x88   : > { %v1840_v22 = vsel %vm3631_vm6, %v1616_v60, 0.0  ;;  %v1871_v21 = vadd.f32 %v1743_v14, %v1615_v51  ;;  %v1143_v2 = vmul.f32 %v3701_v18, %v3680_v45  ;;  %v1144_v1 = vmul.f32 %v3701_v18, %v3682_v16 }
  0x89   : > { %v1872_v32 = vadd.f32 %v1840_v22, %v1744_v49  ;;  %vm3709_vm8 = vcmp.lt.s32.totalorder %v607_v59, 15  ;;  %v1104_v40 = vadd.f32 %v1072_v31, %v1033_v55  ;;  %v1105_v38 = vadd.f32 %v1073_v28, %v1034_v5  ;;  %v3749_v5 = vld [vmem:[%s4140_s3 + $0x2] ss:$0 sm:$0xff] }
  0x8a   : > { %v1244_v33 = vmul.f32 %v3718_v27, %v3432_v12  ;;  %v1245_v39 = vmul.f32 %v3718_v27, %v3442_v58  ;;  %v1283_v29 = vmul.f32 %v3727_v25, %v3495_v48  ;;  %v1284_v23 = vmul.f32 %v3727_v25, %v3505_v0  ;;  %v3738_v12 = vld [vmem:[%s4140_s3 + $0x6] ss:$0 sm:$0xff] }
  0x8b   : > { %v1890_v6 = vpack.c.bf16 %v1872_v32, %v1871_v21  ;;  %v1175_v9 = vadd.f32 %v1143_v2, %v1104_v40  ;;  %v1176_v50 = vadd.f32 %v1144_v1, %v1105_v38  ;;  %v1354_v58 = vmul.f32 %v3738_v12, %v3707_v15  ;;  %v3766_v1 = vld [vmem:[#allocation2 + $0x78] sm:$0xff] }
  0x8c   : > { %v1315_v11 = vadd.f32 %v1283_v29, %v1244_v33  ;;  %v1316_v24 = vadd.f32 %v1284_v23, %v1245_v39  ;;  %v1355_v55 = vmul.f32 %v3738_v12, %v3713_v46  ;;  %v1455_v51 = vmul.f32 %v3749_v5, %v3450_v7  ;;  %v3772_v33 = vld [vmem:[#allocation2 + $0x80] sm:$0xff] }
  0x8d   : > { %2616 = vmatmul.mubr.msk.bf16.gmra.mrb[8].mxu1 %vm420_vm1, %v1890_v6  ;;  %v1456_v60 = vmul.f32 %v3749_v5, %v3456_v36  ;;  %v1494_v14 = vmul.f32 %v3089_v26, %v3517_v47  ;;  %v1495_v49 = vmul.f32 %v3089_v26, %v3519_v13  ;;  %v1565_v59 = vmul.f32 %v3105_v35, %v3733_v19 }
  0x8e   : > { %v1386_v31 = vadd.f32 %v1354_v58, %v1315_v11  ;;  %v1387_v28 = vadd.f32 %v1355_v55, %v1316_v24  ;;  %v1566_v7 = vmul.f32 %v3105_v35, %v3742_v8  ;;  %v518_v22 = vadd.s32 80, %v4191_v34  ;;  %v3787_v11 = vld [vmem:[#allocation2 + $0x77] sm:$0xff] }
  0x8f   : > { %v1526_v21 = vadd.f32 %v1494_v14, %v1455_v51  ;;  %v1527_v2 = vadd.f32 %v1495_v49, %v1456_v60  ;;  %v519_v36 = vadd.s32 88, %v4191_v34  ;;  %v1035_v26 = vmul.f32 %v3612_v41, %v3475_v52  ;;  %v3797_v51 = vld [vmem:[#allocation2 + $0x7f] sm:$0xff] }
  0x90   : > { %v1693_v32 = vsel %vm3688_vm7, %v1386_v31, 0.0  ;;  %v1726_v40 = vadd.f32 %v1387_v28, %v1176_v50  ;;  %v614_v38 = vand.u32 15, %v518_v22  ;;  %v1036_v35 = vmul.f32 %v3612_v41, %v3481_v30  ;;  %v3814_v22 = vld [vmem:[#allocation2 + $0x79] sm:$0xff] }
  0x91   : > { %v1597_v39 = vadd.f32 %v1565_v59, %v1526_v21  ;;  %v1598_v29 = vadd.f32 %v1566_v7, %v1527_v2  ;;  %v1725_v23 = vadd.f32 %v1693_v32, %v1175_v9  ;;  %v621_v6 = vand.u32 15, %v519_v36  ;;  %v3816_v21 = vld [vmem:[#allocation2 + $0x81] sm:$0xff] }
  0x92   : > { %vm3777_vm9 = vcmp.gt.s32.totalorder %v614_v38, 0  ;;  %v1074_v52 = vmul.f32 %v3627_v63, %v3680_v45  ;;  %v1075_v44 = vmul.f32 %v3627_v63, %v3682_v16  ;;  %v1145_v50 = vmul.f32 %v3701_v18, %v3766_v1 }
  0x93   : > { %v1822_v30 = vsel %vm3709_vm8, %v1598_v29, 0.0  ;;  %v1853_v9 = vadd.f32 %v1725_v23, %v1597_v39  ;;  %vm3791_vm10 = vcmp.lt.s32.totalorder %v621_v6, 15  ;;  %v1146_v55 = vmul.f32 %v3701_v18, %v3772_v33  ;;  %v3829_v39 = vld [vmem:[%s4140_s3 + $0x5] ss:$0 sm:$0xff] }
  0x94   : > { %v1854_v60 = vadd.f32 %v1822_v30, %v1726_v40  ;;  %v1106_v14 = vadd.f32 %v1074_v52, %v1035_v26  ;;  %v1107_v53 = vadd.f32 %v1075_v44, %v1036_v35  ;;  %v1246_v49 = vmul.f32 %v3718_v27, %v3495_v48 }
  0x95   : > { %v1247_v59 = vmul.f32 %v3718_v27, %v3505_v0  ;;  %v1285_v31 = vmul.f32 %v3727_v25, %v3707_v15  ;;  %v1286_v28 = vmul.f32 %v3727_v25, %v3713_v46  ;;  %v1356_v7 = vmul.f32 %v3738_v12, %v3787_v11  ;;  %v500_v0 = vld [vmem:[%s3802_s29] sm:$0xff] }
  0x96   : > { %v1881_v2 = vpack.c.bf16 %v1854_v60, %v1853_v9  ;;  %v1177_v36 = vadd.f32 %v1145_v50, %v1106_v14  ;;  %v1178_v26 = vadd.f32 %v1146_v55, %v1107_v53  ;;  %v1357_v48 = vmul.f32 %v3738_v12, %v3797_v51  ;;  %v3848_v53 = vld [vmem:[#allocation2 + $0x108] sm:$0xff] }
  0x97   : > { %v1317_v32 = vadd.f32 %v1285_v31, %v1246_v49  ;;  %v1318_v40 = vadd.f32 %v1286_v28, %v1247_v59  ;;  %v1457_v38 = vmul.f32 %v3749_v5, %v3517_v47  ;;  %v1458_v35 = vmul.f32 %v3749_v5, %v3519_v13  ;;  %v3838_v47 = vld [vmem:[%s4140_s3 + $0x8] ss:$0 sm:$0xff] }
  0x98   : > { %2599 = vmatprep.mubr.msk.bf16.mxu0 %vm420_vm1, %v1881_v2  ;;  %v1496_v29 = vmul.f32 %v3829_v39, %v3733_v19  ;;  %v1497_v23 = vmul.f32 %v3829_v39, %v3742_v8  ;;  %v1567_v13 = vmul.f32 %v3838_v47, %v3814_v22  ;;  %v1568_v6 = vmul.f32 %v3838_v47, %v3816_v21 }
  0x99   : > { %v1388_v52 = vadd.f32 %v1356_v7, %v1317_v32  ;;  %v1389_v44 = vadd.f32 %v1357_v48, %v1318_v40  ;;  %v503_v50 = vmul.f32 0.0, %v500_v0  ;;  %v536_v30 = vadd.s32 224, %v4191_v34  ;;  %v1058_v7 = vld [vmem:[#allocation2 + $0x110] sm:$0xff] }
  0x9a   : > { %v1528_v9 = vadd.f32 %v1496_v29, %v1457_v38  ;;  %v1529_v55 = vadd.f32 %v1497_v23, %v1458_v35  ;;  %v537_v60 = vadd.s32 232, %v4191_v34  ;;  %v1053_v14 = vmul.f32 %v3612_v41, %v3538_v37  ;;  %v1268_v38 = vld [vmem:[#allocation2 + $0x107] sm:$0xff]  ;;  %v1269_v23 = vld [vmem:[#allocation2 + $0x10f] sm:$0xff] }
  0x9b   : > { %v1695_v49 = vsel %vm3777_vm9, %v1388_v52, 0.0  ;;  %v1728_v59 = vadd.f32 %v1389_v44, %v1178_v26  ;;  %505 = vst.msk [vmem:[#allocation2 + $0x118] sm:$0xff] %vm420_vm1, %v503_v50  ;;  %v740_v31 = vand.u32 15, %v536_v30  ;;  %v1054_v28 = vmul.f32 %v3612_v41, %v3546_v57 }
  0x9c   : > { %v1599_v2 = vadd.f32 %v1567_v13, %v1528_v9  ;;  %v1600_v48 = vadd.f32 %v1568_v6, %v1529_v55  ;;  %v1727_v0 = vadd.f32 %v1695_v49, %v1177_v36  ;;  %v747_v32 = vand.u32 15, %v537_v60  ;;  %v1479_v55 = vld [vmem:[#allocation2 + $0x109] sm:$0xff] }
  0x9d   : > { %vm3855_vm11 = vcmp.gt.s32.totalorder %v740_v31, 0  ;;  %v1092_v37 = vmul.f32 %v3627_v63, %v3605_v56  ;;  %v1093_v58 = vmul.f32 %v3627_v63, %v3607_v61  ;;  %v1163_v26 = vmul.f32 %v3701_v18, %v3848_v53  ;;  %v501_v31 = vld [vmem:[%s3802_s29 + $0x8] sm:$0xff] }
  0x9e   : > { %v1824_v57 = vsel %vm3791_vm10, %v1600_v48, 0.0  ;;  %v1855_v35 = vadd.f32 %v1727_v0, %v1599_v2  ;;  %vm3867_vm12 = vcmp.lt.s32.totalorder %v747_v32, 15  ;;  %v1164_v29 = vmul.f32 %v3701_v18, %v1058_v7 }
  0x9f   : > { %v1856_v13 = vadd.f32 %v1824_v57, %v1728_v59  ;;  %v1124_v6 = vadd.f32 %v1092_v37, %v1053_v14  ;;  %v1125_v52 = vadd.f32 %v1093_v58, %v1054_v28  ;;  %v1264_v44 = vmul.f32 %v3718_v27, %v3562_v4 }
  0xa0   : > { %v1265_v50 = vmul.f32 %v3718_v27, %v3572_v62  ;;  %v1303_v24 = vmul.f32 %v3727_v25, %v3641_v43  ;;  %v1304_v30 = vmul.f32 %v3727_v25, %v3643_v54  ;;  %v1374_v9 = vmul.f32 %v3738_v12, %v1268_v38 }
  0xa1   : > { %v1882_v60 = vpack.c.bf16 %v1856_v13, %v1855_v35  ;;  %v1195_v49 = vadd.f32 %v1163_v26, %v1124_v6  ;;  %v1196_v59 = vadd.f32 %v1164_v29, %v1125_v52  ;;  %v1375_v14 = vmul.f32 %v3738_v12, %v1269_v23 }
  0xa2   : > { %v1335_v28 = vadd.f32 %v1303_v24, %v1264_v44  ;;  %v1336_v4 = vadd.f32 %v1304_v30, %v1265_v50  ;;  %v1475_v62 = vmul.f32 %v3749_v5, %v3584_v42  ;;  %v1476_v2 = vmul.f32 %v3749_v5, %v3586_v17  ;;  %v1480_v48 = vld [vmem:[#allocation2 + $0x111] sm:$0xff] }
  0xa3   : > { %2600 = vmatmul.mubr.msk.bf16.gmra.mrb[8].mxu0 %vm420_vm1, %v1882_v60  ;;  %v1514_v0 = vmul.f32 %v3829_v39, %v3659_v10  ;;  %v1515_v32 = vmul.f32 %v3829_v39, %v3661_v3  ;;  %v1585_v37 = vmul.f32 %v3838_v47, %v1479_v55  ;;  %v1586_v58 = vmul.f32 %v3838_v47, %v1480_v48  ;;  %v1128_v52 = vld [vmem:[#allocation2 + $0x118] sm:$0xff] }
  0xa4   : > { %v1406_v26 = vadd.f32 %v1374_v9, %v1335_v28  ;;  %v1407_v57 = vadd.f32 %v1375_v14, %v1336_v4  ;;  %v504_v35 = vmul.f32 0.0, %v501_v31  ;;  %v538_v42 = vadd.s32 240, %v4191_v34  ;;  %v1339_v4 = vld [vmem:[#allocation2 + $0x117] sm:$0xff] }
  0xa5   : > { %v1546_v29 = vadd.f32 %v1514_v0, %v1475_v62  ;;  %v1547_v17 = vadd.f32 %v1515_v32, %v1476_v2  ;;  %v539_v13 = vadd.s32 248, %v4191_v34  ;;  %v1055_v6 = vmul.f32 %v3612_v41, %v3605_v56 }
  0xa6   : > { %v1713_v44 = vsel %vm3855_vm11, %v1406_v26, 0.0  ;;  %v1746_v50 = vadd.f32 %v1407_v57, %v1196_v59  ;;  %506 = vst.msk [vmem:[#allocation2 + $0x120] sm:$0xff] %vm420_vm1, %v504_v35  ;;  %v754_v24 = vand.u32 15, %v538_v42  ;;  %v1056_v30 = vmul.f32 %v3612_v41, %v3607_v61 }
  0xa7   : > { %v1617_v9 = vadd.f32 %v1585_v37, %v1546_v29  ;;  %v1618_v60 = vadd.f32 %v1586_v58, %v1547_v17  ;;  %v1745_v14 = vadd.f32 %v1713_v44, %v1195_v49  ;;  %v761_v31 = vand.u32 15, %v539_v13 }
  0xa8   : > { %vm3903_vm13 = vcmp.gt.s32.totalorder %v754_v24, 0  ;;  %v1094_v56 = vmul.f32 %v3627_v63, %v3848_v53  ;;  %v1095_v40 = vmul.f32 %v3627_v63, %v1058_v7  ;;  %v1165_v59 = vmul.f32 %v3701_v18, %v1128_v52 }
  0xa9   : > { %v1842_v62 = vsel %vm3867_vm12, %v1618_v60, 0.0  ;;  %v1873_v61 = vadd.f32 %v1745_v14, %v1617_v9  ;;  %vm3913_vm14 = vcmp.lt.s32.totalorder %v761_v31, 15  ;;  %v1266_v49 = vmul.f32 %v3718_v27, %v3641_v43 }
  0xaa   : > { %v1874_v0 = vadd.f32 %v1842_v62, %v1746_v50  ;;  %v1126_v32 = vadd.f32 %v1094_v56, %v1055_v6  ;;  %v1127_v37 = vadd.f32 %v1095_v40, %v1056_v30  ;;  %v1267_v53 = vmul.f32 %v3718_v27, %v3643_v54  ;;  %v2789_v56 = vld [vmem:[#allocation2 + $0x91] sm:$0xff] }
  0xab   : > { %v1305_v7 = vmul.f32 %v3727_v25, %v1268_v38  ;;  %v1306_v58 = vmul.f32 %v3727_v25, %v1269_v23  ;;  %v1376_v36 = vmul.f32 %v3738_v12, %v1339_v4  ;;  %v1477_v26 = vmul.f32 %v3749_v5, %v3659_v10 }
  0xac   : > { %v1891_v57 = vpack.c.bf16 %v1874_v0, %v1873_v61  ;;  %v1197_v35 = vadd.f32 %v1165_v59, %v1126_v32  ;;  %v1478_v43 = vmul.f32 %v3749_v5, %v3661_v3  ;;  %v1516_v42 = vmul.f32 %v3829_v39, %v1479_v55 }
  0xad   : > { %v1129_v29 = vld [vmem:[#allocation2 + $0x120] sm:$0xff]  ;;  %v1337_v17 = vadd.f32 %v1305_v7, %v1266_v49  ;;  %v1338_v13 = vadd.f32 %v1306_v58, %v1267_v53  ;;  %v1517_v38 = vmul.f32 %v3829_v39, %v1480_v48  ;;  %v520_v23 = vadd.s32 96, %v4191_v34 }
  0xae   : > { %v1340_v54 = vld [vmem:[#allocation2 + $0x11f] sm:$0xff]  ;;  %2619 = vmatprep.mubr.msk.bf16.mxu1 %vm420_vm1, %v1891_v57  ;;  %v1166_v10 = vmul.f32 %v3701_v18, %v1129_v29  ;;  %v1548_v44 = vadd.f32 %v1516_v42, %v1477_v26  ;;  %v521_v9 = vadd.s32 104, %v4191_v34  ;;  %v3938_v40 = vmul.f32 %v2789_v56, %v3829_v39  ;;  %v2791_v57 = vld [vmem:[#allocation2 + $0x90] sm:$0xff] }
  0xaf   : > { %v1550_v6 = vld [vmem:[#allocation2 + $0x119] sm:$0xff]  ;;  %v1377_v52 = vmul.f32 %v3738_v12, %v1340_v54  ;;  %v1551_v50 = vld [vmem:[#allocation2 + $0x121] sm:$0xff]  ;;  %v1408_v55 = vadd.f32 %v1376_v36, %v1337_v17  ;;  %v1549_v24 = vadd.f32 %v1517_v38, %v1478_v43  ;;  %v628_v31 = vand.u32 15, %v520_v23  ;;  %v2793_v23 = vld [vmem:[#allocation2 + $0x8f] sm:$0xff] }
  0xb0   : > { %v1587_v3 = vmul.f32 %v3838_v47, %v1550_v6  ;;  %v1588_v30 = vmul.f32 %v3838_v47, %v1551_v50  ;;  %v1198_v48 = vadd.f32 %v1166_v10, %v1127_v37  ;;  %v1037_v62 = vmul.f32 %v3612_v41, %v3680_v45  ;;  %v2790_v36 = vld [vmem:[#allocation2 + $0x88] sm:$0xff] }
  0xb1   : > { %v1409_v60 = vadd.f32 %v1377_v52, %v1338_v13  ;;  %v1715_v4 = vsel %vm3903_vm13, %v1408_v55, 0.0  ;;  %v635_v0 = vand.u32 15, %v521_v9  ;;  %v1038_v32 = vmul.f32 %v3612_v41, %v3682_v16  ;;  %v2792_v13 = vld [vmem:[#allocation2 + $0x87] sm:$0xff] }
  0xb2   : > { %v1619_v14 = vadd.f32 %v1587_v3, %v1548_v44  ;;  %v1620_v59 = vadd.f32 %v1588_v30, %v1549_v24  ;;  %v1747_v61 = vadd.f32 %v1715_v4, %v1197_v35  ;;  %vm3948_vm15 = vcmp.gt.s32.totalorder %v628_v31, 0  ;;  %v2794_v3 = vld [vmem:[#allocation2 + $0x89] sm:$0xff] }
  0xb3   : > { %v1748_v49 = vadd.f32 %v1409_v60, %v1198_v48  ;;  %v1076_v28 = vmul.f32 %v3627_v63, %v3766_v1  ;;  %v1077_v7 = vmul.f32 %v3627_v63, %v3772_v33  ;;  %v1147_v26 = vmul.f32 %v2790_v36, %v3701_v18 }
  0xb4   : > { %v1844_v37 = vsel %vm3913_vm14, %v1620_v59, 0.0  ;;  %v1875_v45 = vadd.f32 %v1747_v61, %v1619_v14  ;;  %v1148_v16 = vmul.f32 %v2791_v57, %v3701_v18  ;;  %v1248_v43 = vmul.f32 %v3718_v27, %v3707_v15 }
  0xb5   : > { %v1876_v58 = vadd.f32 %v1844_v37, %v1748_v49  ;;  %v1108_v2 = vadd.f32 %v1076_v28, %v1037_v62  ;;  %v1109_v35 = vadd.f32 %v1077_v7, %v1038_v32  ;;  %v1249_v42 = vmul.f32 %v3718_v27, %v3713_v46  ;;  %v4235_v32 = vld [vmem:[#allocation4_spill] sm:$0xff]  ;;  %v2796_v7 = vld [vmem:[#allocation2 + $0xa0] sm:$0xff] }
  0xb6   : > { %v1287_v63 = vmul.f32 %v3727_v25, %v3787_v11  ;;  %v1288_v17 = vmul.f32 %v3727_v25, %v3797_v51  ;;  %v1358_v54 = vmul.f32 %v2792_v13, %v3738_v12  ;;  %v1359_v10 = vmul.f32 %v2793_v23, %v3738_v12 }
  0xb7   : > { %v1892_v29 = vpack.c.bf16 %v1876_v58, %v1875_v45  ;;  %v1179_v38 = vadd.f32 %v1147_v26, %v1108_v2  ;;  %v1180_v6 = vadd.f32 %v1148_v16, %v1109_v35  ;;  %v1459_v15 = vmul.f32 %v3749_v5, %v3733_v19  ;;  %v2797_v35 = vld [vmem:[#allocation2 + $0x97] sm:$0xff] }
  0xb8   : > { %v1319_v46 = vadd.f32 %v1287_v63, %v1248_v43  ;;  %v1320_v52 = vadd.f32 %v1288_v17, %v1249_v42  ;;  %v1460_v44 = vmul.f32 %v3749_v5, %v3742_v8  ;;  %v1498_v25 = vmul.f32 %v3829_v39, %v3814_v22  ;;  %v4239_v42 = vld [vmem:[#allocation8_spill] sm:$0xff]  ;;  %v4240_v63 = vld [vmem:[#allocation9_spill] sm:$0xff] }
  0xb9   : > { %2620 = vmatmul.mubr.msk.bf16.gmra.mrb[12].mxu1 %vm420_vm1, %v1892_v29  ;;  %v1499_v50 = vmul.f32 %v3829_v39, %v3816_v21  ;;  %v1569_v55 = vmul.f32 %v2794_v3, %v3838_v47  ;;  %v1570_v24 = vmul.f32 %v2789_v56, %v3838_v47  ;;  %v522_v19 = vadd.s32 112, %v4191_v34  ;;  %v2798_v17 = vld [vmem:[#allocation2 + $0x9f] sm:$0xff] }
  0xba   : > { %v1390_v30 = vadd.f32 %v1358_v54, %v1319_v46  ;;  %v1391_v9 = vadd.f32 %v1359_v10, %v1320_v52  ;;  %v1530_v48 = vadd.f32 %v1498_v25, %v1459_v15  ;;  %v523_v60 = vadd.s32 120, %v4191_v34 }
  0xbb   : > { %v1531_v14 = vadd.f32 %v1499_v50, %v1460_v44  ;;  %v642_v8 = vand.u32 15, %v522_v19  ;;  %v1039_v31 = vmul.f32 %v3612_v41, %v3766_v1  ;;  %v1040_v39 = vmul.f32 %v3612_v41, %v3772_v33  ;;  %v4238_v1 = vld [vmem:[#allocation5_spill] sm:$0xff]  ;;  %v2795_v33 = vld [vmem:[#allocation2 + $0x98] sm:$0xff] }
  0xbc   : > { %vm3985_vm0 = vcmp.lt.s32.totalorder %v635_v0, 15  ;;  %v1601_v56 = vadd.f32 %v1569_v55, %v1530_v48  ;;  %v1697_v4 = vsel %vm3948_vm15, %v1390_v30, 0.0  ;;  %v1730_v62 = vadd.f32 %v1391_v9, %v1180_v6  ;;  %v2800_v6 = vld [vmem:[#allocation2 + $0xa1] sm:$0xff] }
  0xbd   : > { %v1602_v61 = vadd.f32 %v1570_v24, %v1531_v14  ;;  %v1729_v49 = vadd.f32 %v1697_v4, %v1179_v38  ;;  %v649_v34 = vand.u32 15, %v523_v60  ;;  %v1110_v37 = vadd.f32 %v4235_v32, %v1039_v31 }
  0xbe   : > { %vm3992_vm2 = vcmp.gt.s32.totalorder %v642_v8, 0  ;;  %v1111_v41 = vadd.f32 %v4238_v1, %v1040_v39  ;;  %v1149_v0 = vmul.f32 %v2795_v33, %v3701_v18  ;;  %v1150_v45 = vmul.f32 %v2796_v7, %v3701_v18 }
  0xbf   : > { %v1826_v53 = vsel %vm3985_vm0, %v1602_v61, 0.0  ;;  %v1857_v58 = vadd.f32 %v1729_v49, %v1601_v56  ;;  %v1250_v36 = vmul.f32 %v3718_v27, %v3787_v11  ;;  %v1251_v26 = vmul.f32 %v3718_v27, %v3797_v51  ;;  %v2799_v51 = vld [vmem:[#allocation2 + $0x99] sm:$0xff] }
  0xc0   : > { %v1858_v57 = vadd.f32 %v1826_v53, %v1730_v62  ;;  %v1181_v16 = vadd.f32 %v1149_v0, %v1110_v37  ;;  %v1182_v2 = vadd.f32 %v1150_v45, %v1111_v41  ;;  %v1360_v43 = vmul.f32 %v2797_v35, %v3738_v12 }
  0xc1   : > { %v1321_v29 = vadd.f32 %v4239_v42, %v1250_v36  ;;  %v1322_v18 = vadd.f32 %v4240_v63, %v1251_v26  ;;  %v1361_v13 = vmul.f32 %v2798_v17, %v3738_v12  ;;  %v1461_v54 = vmul.f32 %v3749_v5, %v3814_v22 }
  0xc2   : > { %v1883_v11 = vpack.c.bf16 %v1858_v57, %v1857_v58  ;;  %v1462_v27 = vmul.f32 %v3749_v5, %v3816_v21  ;;  %v1571_v38 = vmul.f32 %v2799_v51, %v3838_v47  ;;  %v1572_v23 = vmul.f32 %v2800_v6, %v3838_v47 }
  0xc3   : > { %v1392_v10 = vadd.f32 %v1360_v43, %v1321_v29  ;;  %v1393_v15 = vadd.f32 %v1361_v13, %v1322_v18  ;;  %v1532_v46 = vadd.f32 %v3552_v20, %v1461_v54  ;;  %vm971_vm3 = vcmp.lt.s32.totalorder %v649_v34, 15  ;;  %v4024_v20 = vld [vmem:[%s4142_s5] ss:$0 sm:$0xff] }
  0xc4   : > { %2603 = vmatprep.mubr.msk.bf16.mxu0 %vm420_vm1, %v1883_v11  ;;  %v1533_v12 = vadd.f32 %v3938_v40, %v1462_v27 }
  0xc5   : > { %v1603_v22 = vadd.f32 %v1571_v38, %v1532_v46  ;;  %v1699_v52 = vsel %vm3992_vm2, %v1392_v10, 0.0  ;;  %v1732_v5 = vadd.f32 %v1393_v15, %v1182_v2 }
  0xc6   : > { %v1604_v21 = vadd.f32 %v1572_v23, %v1533_v12  ;;  %v1731_v44 = vadd.f32 %v1699_v52, %v1181_v16 }
  0xc8   : > { %v1828_v25 = vsel %vm971_vm3, %v1604_v21, 0.0  ;;  %v1859_v50 = vadd.f32 %v1731_v44, %v1603_v22 }
  0xc9   : > { %v1860_v3 = vadd.f32 %v1828_v25, %v1732_v5 }
  0xcb   : > { %v1884_v47 = vpack.c.bf16 %v1860_v3, %v1859_v50 }
  0xcd   : > { %2604 = vmatmul.mubr.msk.bf16.gmra.mrb[12].mxu0 %vm420_vm1, %v1884_v47 }
 0x10d   : > { %v2609_v40 = vpop.f32.mrb[0].mxu1 }
 0x10e   : > { %v2060_v55 = vadd.f32 %v2609_v40, %v4024_v20  ;;  %v2051_v24 = vpop.f32.mrb[1].mxu1 }
 0x10f   : > { %v2052_v19 = vadd.f32 %v4024_v20, %v2051_v24  ;;  %v2610_v30 = vpop.f32.mrb[2].mxu1 }
 0x110   : > { %v2550_v9 = vmul.f32 -1.442695, %v2060_v55  ;;  %v2063_v48 = vadd.f32 %v2610_v30, %v4024_v20  ;;  %v2054_v60 = vpop.f32.mrb[3].mxu1 }
 0x111   : > { %v2548_v14 = vmul.f32 -1.442695, %v2052_v19  ;;  %v2055_v8 = vadd.f32 %v4024_v20, %v2054_v60 }
 0x112   : > { %2652 = vpow2.f32 %v2550_v9  ;;  %v2551_v31 = vmul.f32 -1.442695, %v2063_v48 }
 0x113   : > { %2654 = vpow2.f32 %v2548_v14  ;;  %v2549_v39 = vmul.f32 -1.442695, %v2055_v8 }
 0x114   : > { %2656 = vpow2.f32 %v2551_v31 }
 0x115   : > { %2658 = vpow2.f32 %v2549_v39 }
 0x11c   : > { %v2653_v59 = vpop.eup %2652 }
 0x11d   : > { %v2655_v56 = vpop.eup %2654  ;;  %v2228_v4 = vadd.f32 1.0, %v2653_v59 }
 0x11e   : > { %v2657_v62 = vpop.eup %2656  ;;  %v2226_v61 = vadd.f32 1.0, %v2655_v56 }
 0x11f   : > { %v2659_v49 = vpop.eup %2658  ;;  %2660 = vrcp.f32 %v2228_v4  ;;  %v2229_v34 = vadd.f32 1.0, %v2657_v62 }
 0x120   : > { %2662 = vrcp.f32 %v2226_v61  ;;  %v2227_v32 = vadd.f32 1.0, %v2659_v49 }
 0x121   : > { %2664 = vrcp.f32 %v2229_v34 }
 0x122   : > { %2666 = vrcp.f32 %v2227_v32 }
 0x123   : > { %v2593_v37 = vpop.f32.mrb[0].mxu0 }
 0x124   : > { %v1996_v28 = vadd.f32 %v2593_v37, %v4024_v20  ;;  %v1987_v1 = vpop.f32.mrb[1].mxu0 }
 0x125   : > { %v1988_v41 = vadd.f32 %v4024_v20, %v1987_v1  ;;  %v2594_v33 = vpop.f32.mrb[2].mxu0 }
 0x126   : > { %v2534_v0 = vmul.f32 -1.442695, %v1996_v28  ;;  %v1999_v7 = vadd.f32 %v2594_v33, %v4024_v20  ;;  %v1990_v45 = vpop.f32.mrb[3].mxu0 }
 0x127   : > { %v2532_v53 = vmul.f32 -1.442695, %v1988_v41  ;;  %v1991_v58 = vadd.f32 %v4024_v20, %v1990_v45 }
 0x128   : > { %2668 = vpow2.f32 %v2534_v0  ;;  %v2535_v36 = vmul.f32 -1.442695, %v1999_v7 }
 0x129   : > { %2670 = vpow2.f32 %v2532_v53  ;;  %v2533_v26 = vmul.f32 -1.442695, %v1991_v58  ;;  %v2661_v57 = vpop.eup %2660 }
 0x12a   : > { %2672 = vpow2.f32 %v2535_v36  ;;  %v2663_v16 = vpop.eup %2662  ;;  %v2324_v2 = vmul.f32 %v2661_v57, %v2060_v55 }
 0x12b   : > { %2674 = vpow2.f32 %v2533_v26  ;;  %v2665_v35 = vpop.eup %2664  ;;  %v2322_v43 = vmul.f32 %v2663_v16, %v2052_v19 }
 0x12c   : > { %v2667_v42 = vpop.eup %2666  ;;  %2356 = vst.msk [vmem:[%s4038_s14 + $0x90] sm:$0xff] %vm420_vm1, %v2324_v2  ;;  %v2325_v29 = vmul.f32 %v2665_v35, %v2063_v48 }
 0x12d   : > { %2354 = vst.msk [vmem:[%s4038_s14 + $0x80] sm:$0xff] %vm420_vm1, %v2322_v43  ;;  %v2323_v63 = vmul.f32 %v2667_v42, %v2055_v8 }
 0x12e   : > { %2357 = vst.msk [vmem:[%s4038_s14 + $0x98] sm:$0xff] %vm420_vm1, %v2325_v29 }
 0x12f   : > { %2355 = vst.msk [vmem:[%s4038_s14 + $0x88] sm:$0xff] %vm420_vm1, %v2323_v63 }
 0x132   : > { %v2669_v18 = vpop.eup %2668 }
 0x133   : > { %v2671_v17 = vpop.eup %2670  ;;  %v2212_v13 = vadd.f32 1.0, %v2669_v18 }
 0x134   : > { %v2673_v54 = vpop.eup %2672  ;;  %v2210_v11 = vadd.f32 1.0, %v2671_v17 }
 0x135   : > { %v2675_v27 = vpop.eup %2674  ;;  %2676 = vrcp.f32 %v2212_v13  ;;  %v2213_v51 = vadd.f32 1.0, %v2673_v54 }
 0x136   : > { %2678 = vrcp.f32 %v2210_v11  ;;  %v2211_v38 = vadd.f32 1.0, %v2675_v27 }
 0x137   : > { %v2613_v6 = vpop.f32.mrb[4].mxu1  ;;  %2680 = vrcp.f32 %v2213_v51 }
 0x138   : > { %v2076_v23 = vadd.f32 %v2613_v6, %v4024_v20  ;;  %v2067_v10 = vpop.f32.mrb[5].mxu1  ;;  %2682 = vrcp.f32 %v2211_v38 }
 0x139   : > { %v2068_v15 = vadd.f32 %v4024_v20, %v2067_v10  ;;  %v2614_v46 = vpop.f32.mrb[6].mxu1 }
 0x13a   : > { %v2554_v12 = vmul.f32 -1.442695, %v2076_v23  ;;  %v2079_v22 = vadd.f32 %v2614_v46, %v4024_v20  ;;  %v2070_v52 = vpop.f32.mrb[7].mxu1 }
 0x13b   : > { %v2552_v5 = vmul.f32 -1.442695, %v2068_v15  ;;  %v2071_v21 = vadd.f32 %v4024_v20, %v2070_v52 }
 0x13c   : > { %2684 = vpow2.f32 %v2554_v12  ;;  %v2555_v44 = vmul.f32 -1.442695, %v2079_v22 }
 0x13d   : > { %2686 = vpow2.f32 %v2552_v5  ;;  %v2553_v25 = vmul.f32 -1.442695, %v2071_v21 }
 0x13e   : > { %2688 = vpow2.f32 %v2555_v44 }
 0x13f   : > { %2690 = vpow2.f32 %v2553_v25  ;;  %v2677_v50 = vpop.eup %2676 }
 0x140   : > { %v2679_v3 = vpop.eup %2678  ;;  %v2308_v47 = vmul.f32 %v2677_v50, %v1996_v28 }
 0x141   : > { %v2681_v40 = vpop.eup %2680  ;;  %v2306_v55 = vmul.f32 %v2679_v3, %v1988_v41 }
 0x142   : > { %v2683_v24 = vpop.eup %2682  ;;  %2340 = vst.msk [vmem:[%s4038_s14 + $0x10] sm:$0xff] %vm420_vm1, %v2308_v47  ;;  %v2309_v19 = vmul.f32 %v2681_v40, %v1999_v7 }
 0x143   : > { %2338 = vst.msk [vmem:[%s4038_s14] sm:$0xff] %vm420_vm1, %v2306_v55  ;;  %v2307_v30 = vmul.f32 %v2683_v24, %v1991_v58 }
 0x144   : > { %2341 = vst.msk [vmem:[%s4038_s14 + $0x18] sm:$0xff] %vm420_vm1, %v2309_v19 }
 0x145   : > { %2339 = vst.msk [vmem:[%s4038_s14 + $0x8] sm:$0xff] %vm420_vm1, %v2307_v30 }
 0x146   : > { %v2685_v9 = vpop.eup %2684 }
 0x147   : > { %v2687_v48 = vpop.eup %2686  ;;  %v2232_v60 = vadd.f32 1.0, %v2685_v9 }
 0x148   : > { %v2689_v14 = vpop.eup %2688  ;;  %v2230_v8 = vadd.f32 1.0, %v2687_v48 }
 0x149   : > { %v2691_v31 = vpop.eup %2690  ;;  %2692 = vrcp.f32 %v2232_v60  ;;  %v2233_v39 = vadd.f32 1.0, %v2689_v14 }
 0x14a   : > { %2694 = vrcp.f32 %v2230_v8  ;;  %v2231_v59 = vadd.f32 1.0, %v2691_v31 }
 0x14b   : > { %v2597_v56 = vpop.f32.mrb[4].mxu0  ;;  %2696 = vrcp.f32 %v2233_v39 }
 0x14c   : > { %v2012_v4 = vadd.f32 %v2597_v56, %v4024_v20  ;;  %v2003_v62 = vpop.f32.mrb[5].mxu0  ;;  %2698 = vrcp.f32 %v2231_v59 }
 0x14d   : > { %v2004_v61 = vadd.f32 %v4024_v20, %v2003_v62  ;;  %v2598_v49 = vpop.f32.mrb[6].mxu0 }
 0x14e   : > { %v2538_v34 = vmul.f32 -1.442695, %v2012_v4  ;;  %v2015_v32 = vadd.f32 %v2598_v49, %v4024_v20  ;;  %v2006_v37 = vpop.f32.mrb[7].mxu0 }
 0x14f   : > { %v2536_v28 = vmul.f32 -1.442695, %v2004_v61  ;;  %v2007_v1 = vadd.f32 %v4024_v20, %v2006_v37 }
 0x150   : > { %2700 = vpow2.f32 %v2538_v34  ;;  %v2539_v41 = vmul.f32 -1.442695, %v2015_v32 }
 0x151   : > { %2702 = vpow2.f32 %v2536_v28  ;;  %v2537_v33 = vmul.f32 -1.442695, %v2007_v1 }
 0x152   : > { %2704 = vpow2.f32 %v2539_v41 }
 0x153   : > { %v2693_v0 = vpop.eup %2692  ;;  %2706 = vpow2.f32 %v2537_v33 }
 0x154   : > { %v2695_v7 = vpop.eup %2694  ;;  %v2328_v45 = vmul.f32 %v2693_v0, %v2076_v23 }
 0x155   : > { %v2697_v53 = vpop.eup %2696  ;;  %v2326_v58 = vmul.f32 %v2695_v7, %v2068_v15 }
 0x156   : > { %v2699_v36 = vpop.eup %2698  ;;  %2360 = vst.msk [vmem:[%s4038_s14 + $0xb0] sm:$0xff] %vm420_vm1, %v2328_v45  ;;  %v2329_v26 = vmul.f32 %v2697_v53, %v2079_v22 }
 0x157   : > { %2358 = vst.msk [vmem:[%s4038_s14 + $0xa0] sm:$0xff] %vm420_vm1, %v2326_v58  ;;  %v2327_v57 = vmul.f32 %v2699_v36, %v2071_v21 }
 0x158   : > { %2361 = vst.msk [vmem:[%s4038_s14 + $0xb8] sm:$0xff] %vm420_vm1, %v2329_v26 }
 0x159   : > { %2359 = vst.msk [vmem:[%s4038_s14 + $0xa8] sm:$0xff] %vm420_vm1, %v2327_v57 }
 0x15a   : > { %v2701_v16 = vpop.eup %2700 }
 0x15b   : > { %v2703_v2 = vpop.eup %2702  ;;  %v2216_v35 = vadd.f32 1.0, %v2701_v16 }
 0x15c   : > { %v2705_v43 = vpop.eup %2704  ;;  %v2214_v42 = vadd.f32 1.0, %v2703_v2 }
 0x15d   : > { %v2707_v29 = vpop.eup %2706  ;;  %2708 = vrcp.f32 %v2216_v35  ;;  %v2217_v63 = vadd.f32 1.0, %v2705_v43 }
 0x15e   : > { %2710 = vrcp.f32 %v2214_v42  ;;  %v2215_v18 = vadd.f32 1.0, %v2707_v29 }
 0x15f   : > { %2712 = vrcp.f32 %v2217_v63 }
 0x160   : > { %2714 = vrcp.f32 %v2215_v18  ;;  %v2617_v17 = vpop.f32.mrb[8].mxu1 }
 0x161   : > { %v2092_v13 = vadd.f32 %v2617_v17, %v4024_v20  ;;  %v2083_v54 = vpop.f32.mrb[9].mxu1 }
 0x162   : > { %v2084_v11 = vadd.f32 %v4024_v20, %v2083_v54  ;;  %v2618_v27 = vpop.f32.mrb[10].mxu1 }
 0x163   : > { %v2558_v51 = vmul.f32 -1.442695, %v2092_v13  ;;  %v2095_v38 = vadd.f32 %v2618_v27, %v4024_v20  ;;  %v2086_v6 = vpop.f32.mrb[11].mxu1 }
 0x164   : > { %v2556_v23 = vmul.f32 -1.442695, %v2084_v11  ;;  %v2087_v10 = vadd.f32 %v4024_v20, %v2086_v6 }
 0x165   : > { %2716 = vpow2.f32 %v2558_v51  ;;  %v2559_v15 = vmul.f32 -1.442695, %v2095_v38 }
 0x166   : > { %2718 = vpow2.f32 %v2556_v23  ;;  %v2557_v46 = vmul.f32 -1.442695, %v2087_v10 }
 0x167   : > { %v2709_v12 = vpop.eup %2708  ;;  %2720 = vpow2.f32 %v2559_v15 }
 0x168   : > { %v2711_v22 = vpop.eup %2710  ;;  %v2312_v52 = vmul.f32 %v2709_v12, %v2012_v4  ;;  %2722 = vpow2.f32 %v2557_v46 }
 0x169   : > { %v2713_v5 = vpop.eup %2712  ;;  %v2310_v21 = vmul.f32 %v2711_v22, %v2004_v61 }
 0x16a   : > { %v2715_v44 = vpop.eup %2714  ;;  %2344 = vst.msk [vmem:[%s4038_s14 + $0x30] sm:$0xff] %vm420_vm1, %v2312_v52  ;;  %v2313_v25 = vmul.f32 %v2713_v5, %v2015_v32 }
 0x16b   : > { %2342 = vst.msk [vmem:[%s4038_s14 + $0x20] sm:$0xff] %vm420_vm1, %v2310_v21  ;;  %v2311_v50 = vmul.f32 %v2715_v44, %v2007_v1 }
 0x16c   : > { %2345 = vst.msk [vmem:[%s4038_s14 + $0x38] sm:$0xff] %vm420_vm1, %v2313_v25 }
 0x16d   : > { %2343 = vst.msk [vmem:[%s4038_s14 + $0x28] sm:$0xff] %vm420_vm1, %v2311_v50 }
 0x16f   : > { %v2717_v3 = vpop.eup %2716 }
 0x170   : > { %v2719_v47 = vpop.eup %2718  ;;  %v2236_v40 = vadd.f32 1.0, %v2717_v3 }
 0x171   : > { %v2721_v55 = vpop.eup %2720  ;;  %v2234_v24 = vadd.f32 1.0, %v2719_v47 }
 0x172   : > { %v2723_v19 = vpop.eup %2722  ;;  %2724 = vrcp.f32 %v2236_v40  ;;  %v2237_v30 = vadd.f32 1.0, %v2721_v55 }
 0x173   : > { %2726 = vrcp.f32 %v2234_v24  ;;  %v2235_v9 = vadd.f32 1.0, %v2723_v19 }
 0x174   : > { %2728 = vrcp.f32 %v2237_v30 }
 0x175   : > { %2730 = vrcp.f32 %v2235_v9 }
 0x176   : > { %v2601_v48 = vpop.f32.mrb[8].mxu0 }
 0x177   : > { %v2028_v60 = vadd.f32 %v2601_v48, %v4024_v20  ;;  %v2019_v14 = vpop.f32.mrb[9].mxu0 }
 0x178   : > { %v2020_v8 = vadd.f32 %v4024_v20, %v2019_v14  ;;  %v2602_v31 = vpop.f32.mrb[10].mxu0 }
 0x179   : > { %v2542_v39 = vmul.f32 -1.442695, %v2028_v60  ;;  %v2031_v59 = vadd.f32 %v2602_v31, %v4024_v20  ;;  %v2022_v56 = vpop.f32.mrb[11].mxu0 }
 0x17a   : > { %v2540_v4 = vmul.f32 -1.442695, %v2020_v8  ;;  %v2023_v62 = vadd.f32 %v4024_v20, %v2022_v56 }
 0x17b   : > { %2732 = vpow2.f32 %v2542_v39  ;;  %v2543_v61 = vmul.f32 -1.442695, %v2031_v59 }
 0x17c   : > { %v2725_v49 = vpop.eup %2724  ;;  %2734 = vpow2.f32 %v2540_v4  ;;  %v2541_v34 = vmul.f32 -1.442695, %v2023_v62 }
 0x17d   : > { %v2727_v32 = vpop.eup %2726  ;;  %v2332_v37 = vmul.f32 %v2725_v49, %v2092_v13  ;;  %2736 = vpow2.f32 %v2543_v61 }
 0x17e   : > { %v2729_v28 = vpop.eup %2728  ;;  %v2330_v1 = vmul.f32 %v2727_v32, %v2084_v11  ;;  %2738 = vpow2.f32 %v2541_v34 }
 0x17f   : > { %v2731_v41 = vpop.eup %2730  ;;  %2364 = vst.msk [vmem:[%s4038_s14 + $0xd0] sm:$0xff] %vm420_vm1, %v2332_v37  ;;  %v2333_v33 = vmul.f32 %v2729_v28, %v2095_v38 }
 0x180   : > { %2362 = vst.msk [vmem:[%s4038_s14 + $0xc0] sm:$0xff] %vm420_vm1, %v2330_v1  ;;  %v2331_v0 = vmul.f32 %v2731_v41, %v2087_v10 }
 0x181   : > { %2365 = vst.msk [vmem:[%s4038_s14 + $0xd8] sm:$0xff] %vm420_vm1, %v2333_v33 }
 0x182   : > { %2363 = vst.msk [vmem:[%s4038_s14 + $0xc8] sm:$0xff] %vm420_vm1, %v2331_v0 }
 0x185   : > { %v2733_v7 = vpop.eup %2732 }
 0x186   : > { %v2735_v45 = vpop.eup %2734  ;;  %v2220_v53 = vadd.f32 1.0, %v2733_v7 }
 0x187   : > { %v2737_v58 = vpop.eup %2736  ;;  %v2218_v36 = vadd.f32 1.0, %v2735_v45 }
 0x188   : > { %v2739_v26 = vpop.eup %2738  ;;  %2740 = vrcp.f32 %v2220_v53  ;;  %v2221_v57 = vadd.f32 1.0, %v2737_v58 }
 0x189   : > { %2742 = vrcp.f32 %v2218_v36  ;;  %v2219_v16 = vadd.f32 1.0, %v2739_v26 }
 0x18a   : > { %2744 = vrcp.f32 %v2221_v57 }
 0x18b   : > { %2746 = vrcp.f32 %v2219_v16 }
 0x18c   : > { %v2621_v2 = vpop.f32.mrb[12].mxu1 }
 0x18d   : > { %v2108_v35 = vadd.f32 %v2621_v2, %v4024_v20  ;;  %v2099_v43 = vpop.f32.mrb[13].mxu1 }
 0x18e   : > { %v2100_v42 = vadd.f32 %v4024_v20, %v2099_v43  ;;  %v2622_v29 = vpop.f32.mrb[14].mxu1 }
 0x18f   : > { %v2562_v63 = vmul.f32 -1.442695, %v2108_v35  ;;  %v2111_v18 = vadd.f32 %v2622_v29, %v4024_v20  ;;  %v2102_v17 = vpop.f32.mrb[15].mxu1 }
 0x190   : > { %v2560_v13 = vmul.f32 -1.442695, %v2100_v42  ;;  %v2103_v54 = vadd.f32 %v4024_v20, %v2102_v17 }
 0x191   : > { %2748 = vpow2.f32 %v2562_v63  ;;  %v2563_v11 = vmul.f32 -1.442695, %v2111_v18 }
 0x192   : > { %2750 = vpow2.f32 %v2560_v13  ;;  %v2561_v27 = vmul.f32 -1.442695, %v2103_v54  ;;  %v2741_v51 = vpop.eup %2740 }
 0x193   : > { %2752 = vpow2.f32 %v2563_v11  ;;  %v2743_v38 = vpop.eup %2742  ;;  %v2316_v6 = vmul.f32 %v2741_v51, %v2028_v60 }
 0x194   : > { %2754 = vpow2.f32 %v2561_v27  ;;  %v2745_v23 = vpop.eup %2744  ;;  %v2314_v10 = vmul.f32 %v2743_v38, %v2020_v8 }
 0x195   : > { %v2747_v15 = vpop.eup %2746  ;;  %2348 = vst.msk [vmem:[%s4038_s14 + $0x50] sm:$0xff] %vm420_vm1, %v2316_v6  ;;  %v2317_v46 = vmul.f32 %v2745_v23, %v2031_v59 }
 0x196   : > { %2346 = vst.msk [vmem:[%s4038_s14 + $0x40] sm:$0xff] %vm420_vm1, %v2314_v10  ;;  %v2315_v12 = vmul.f32 %v2747_v15, %v2023_v62 }
 0x197   : > { %2349 = vst.msk [vmem:[%s4038_s14 + $0x58] sm:$0xff] %vm420_vm1, %v2317_v46 }
 0x198   : > { %2347 = vst.msk [vmem:[%s4038_s14 + $0x48] sm:$0xff] %vm420_vm1, %v2315_v12 }
 0x19b   : > { %v2749_v22 = vpop.eup %2748 }
 0x19c   : > { %v2751_v52 = vpop.eup %2750  ;;  %v2240_v5 = vadd.f32 1.0, %v2749_v22 }
 0x19d   : > { %v2753_v21 = vpop.eup %2752  ;;  %v2238_v44 = vadd.f32 1.0, %v2751_v52 }
 0x19e   : > { %v2755_v25 = vpop.eup %2754  ;;  %2756 = vrcp.f32 %v2240_v5  ;;  %v2241_v50 = vadd.f32 1.0, %v2753_v21 }
 0x19f   : > { %2758 = vrcp.f32 %v2238_v44  ;;  %v2239_v3 = vadd.f32 1.0, %v2755_v25 }
 0x1a0   : > { %2760 = vrcp.f32 %v2241_v50  ;;  %v2605_v47 = vpop.f32.mrb[12].mxu0 }
 0x1a1   : > { %2762 = vrcp.f32 %v2239_v3  ;;  %v2044_v40 = vadd.f32 %v2605_v47, %v4024_v20  ;;  %v2035_v55 = vpop.f32.mrb[13].mxu0 }
 0x1a2   : > { %v2036_v24 = vadd.f32 %v4024_v20, %v2035_v55  ;;  %v2606_v19 = vpop.f32.mrb[14].mxu0 }
 0x1a3   : > { %v2546_v30 = vmul.f32 -1.442695, %v2044_v40  ;;  %v2047_v9 = vadd.f32 %v2606_v19, %v4024_v20  ;;  %v2038_v48 = vpop.f32.mrb[15].mxu0 }
 0x1a4   : > { %v2544_v60 = vmul.f32 -1.442695, %v2036_v24  ;;  %v2039_v14 = vadd.f32 %v4024_v20, %v2038_v48 }
 0x1a5   : > { %2764 = vpow2.f32 %v2546_v30  ;;  %v2547_v8 = vmul.f32 -1.442695, %v2047_v9 }
 0x1a6   : > { %2766 = vpow2.f32 %v2544_v60  ;;  %v2545_v31 = vmul.f32 -1.442695, %v2039_v14 }
 0x1a7   : > { %2768 = vpow2.f32 %v2547_v8 }
 0x1a8   : > { %v2757_v39 = vpop.eup %2756  ;;  %2770 = vpow2.f32 %v2545_v31 }
 0x1a9   : > { %v2759_v59 = vpop.eup %2758  ;;  %v2336_v56 = vmul.f32 %v2757_v39, %v2108_v35 }
 0x1aa   : > { %v2761_v4 = vpop.eup %2760  ;;  %v2334_v62 = vmul.f32 %v2759_v59, %v2100_v42 }
 0x1ab   : > { %v2763_v61 = vpop.eup %2762  ;;  %2368 = vst.msk [vmem:[%s4038_s14 + $0xf0] sm:$0xff] %vm420_vm1, %v2336_v56  ;;  %v2337_v49 = vmul.f32 %v2761_v4, %v2111_v18 }
 0x1ac   : > { %2366 = vst.msk [vmem:[%s4038_s14 + $0xe0] sm:$0xff] %vm420_vm1, %v2334_v62  ;;  %v2335_v20 = vmul.f32 %v2763_v61, %v2103_v54 }
 0x1ad   : > { %2369 = vst.msk [vmem:[%s4038_s14 + $0xf8] sm:$0xff] %vm420_vm1, %v2337_v49 }
 0x1ae   : > { %2367 = vst.msk [vmem:[%s4038_s14 + $0xe8] sm:$0xff] %vm420_vm1, %v2335_v20 }
 0x1af   : > { %v2765_v34 = vpop.eup %2764 }
 0x1b0   : > { %v2767_v32 = vpop.eup %2766  ;;  %v2224_v37 = vadd.f32 1.0, %v2765_v34 }
 0x1b1   : > { %v2769_v28 = vpop.eup %2768  ;;  %v2222_v1 = vadd.f32 1.0, %v2767_v32 }
 0x1b2   : > { %v2771_v41 = vpop.eup %2770  ;;  %2772 = vrcp.f32 %v2224_v37  ;;  %v2225_v33 = vadd.f32 1.0, %v2769_v28 }
 0x1b3   : > { %2774 = vrcp.f32 %v2222_v1  ;;  %v2223_v0 = vadd.f32 1.0, %v2771_v41 }
 0x1b4   : > { %2776 = vrcp.f32 %v2225_v33 }
 0x1b5   : > { %2778 = vrcp.f32 %v2223_v0 }
 0x1bc   : > { %v2773_v7 = vpop.eup %2772 }
 0x1bd   : > { %v2775_v45 = vpop.eup %2774  ;;  %v2320_v53 = vmul.f32 %v2773_v7, %v2044_v40 }
 0x1be   : > { %v2777_v58 = vpop.eup %2776  ;;  %v2318_v36 = vmul.f32 %v2775_v45, %v2036_v24 }
 0x1bf   : > { %v2779_v26 = vpop.eup %2778  ;;  %2352 = vst.msk [vmem:[%s4038_s14 + $0x70] sm:$0xff] %vm420_vm1, %v2320_v53  ;;  %v2321_v57 = vmul.f32 %v2777_v58, %v2047_v9 }
 0x1c0   : > { %2350 = vst.msk [vmem:[%s4038_s14 + $0x60] sm:$0xff] %vm420_vm1, %v2318_v36  ;;  %v2319_v16 = vmul.f32 %v2779_v26, %v2039_v14 }
 0x1c1   : > { %2353 = vst.msk [vmem:[%s4038_s14 + $0x78] sm:$0xff] %vm420_vm1, %v2321_v57 }
 0x1c2   : > { %2351 = vst.msk [vmem:[%s4038_s14 + $0x68] sm:$0xff] %vm420_vm1, %v2319_v16 }
 0x1c3 PF: > { %s16_s23 = sadd.s32 1, %s2823_s23   ;;  %s4241_s21 = smov %s2819_s22 }
 0x1c4   : > { %p13_p5 = scmp.ge.s32.totalorder %s16_s23, 4   ;;  %s4242_s22 = smov %s4244_s24 }
 0x1c6   :  { %15 = sbr.rel (!%p13_p5) target bundleno = 2 (0x2), region = 80 }

</bundles_post_ra>
